<compile_context>
chip_gen: v5e
topology: v5e:2x2
jax: 0.10.0
libtpu: 0.0.40
codegen_flags: <defaults>
</compile_context>

<pallas_src>
import functools
import math

import jax
import jax.numpy as jnp
from jax import lax
from jax.experimental import pallas as pl
from jax.experimental.pallas import tpu as pltpu


# --------------------------------------------------------------------------
# The single fused kernel.
# --------------------------------------------------------------------------
def _fused_block_kernel(nw_ref, style_t_ref, wmod_ref, bmod_ref, xup_ref,
                        w1_ref, w2_ref, wimg_ref, chan_ref, bimg_ref,
                        noise_ref, hid_ref, img_ref, *,
                        B, C, Co, W2, N2, up_blk, off_c1, off_c2, off_img):
    f32 = jnp.float32
    L = B * N2

    # ---- 1) all four style-modulation Linears in one small MXU matmul ----
    mods = jnp.dot(wmod_ref[...], style_t_ref[...],
                   preferred_element_type=f32) + bmod_ref[...]      # (rows, B)

    def lanes(m):  # (ch, B) -> (ch, L): broadcast each batch column over its image
        ch = m.shape[0]
        return jnp.concatenate(
            [jnp.broadcast_to(m[:, b:b + 1], (ch, N2)) for b in range(B)], axis=1)

    # ---- 2) flat-position helpers (W2, N2 are powers of two) ----
    pos = lax.broadcasted_iota(jnp.int32, (1, L), 1)
    colw = pos & (W2 - 1)                 # column within a row
    rown = pos & (N2 - 1)                 # flat index within one image
    ok_l = colw != 0                      # (h, w-1) in bounds
    ok_r = colw != (W2 - 1)               # (h, w+1) in bounds
    ok_t = rown >= W2                     # (h-1, w) in bounds
    ok_b = rown < (N2 - W2)               # (h+1, w) in bounds
    s_c = jnp.where((pos & 1) == 0, 1.0, -1.0)    # column-parity sign
    s_r = jnp.where((pos & W2) == 0, 1.0, -1.0)   # row-parity sign

    # ---- 3) IDWT (inverse Haar butterfly) + conv1 input modulation ----
    # TODO(synk): confirm the (LH, HL, HH) band-to-sign convention matches
    # pytorch_wavelets DWTInverse exactly (verified only against the in-file ref).
    ll = xup_ref[0] * lanes(mods[0 * up_blk:0 * up_blk + C])
    lh = xup_ref[1] * lanes(mods[1 * up_blk:1 * up_blk + C])
    hl = xup_ref[2] * lanes(mods[2 * up_blk:2 * up_blk + C])
    hh = xup_ref[3] * lanes(mods[3 * up_blk:3 * up_blk + C])
    up = (ll + s_c * hl) + s_r * (lh + s_c * hh)                  # (C, L)
    x1 = (0.5 * lanes(mods[off_c1:off_c1 + C])) * up              # 0.5 = Haar norm

    # ---- 4) 3x3 conv as 9 accumulated tap matmuls on the flat spatial axis ----
    def conv3x3(x, w_ref):
        acc = None
        t = 0
        for dy in (-1, 0, 1):
            for dx in (-1, 0, 1):
                s = (dy * W2 + dx) % L
                xs = x if s == 0 else jnp.concatenate([x[:, s:], x[:, :s]], axis=1)
                m = None
                if dy == -1:
                    m = ok_t
                elif dy == 1:
                    m = ok_b
                if dx == -1:
                    m = ok_l if m is None else m & ok_l
                elif dx == 1:
                    m = ok_r if m is None else m & ok_r
                if m is not None:
                    xs = jnp.where(m, xs, 0.0)
                p = jnp.dot(w_ref[t], xs, preferred_element_type=f32)
                acc = p if acc is None else acc + p
                t += 1
        return acc

    nw1 = nw_ref[0]
    nw2 = nw_ref[1]

    # ---- 5) conv1: demod + noise + bias + LeakyReLU(0.2) + conv2 in-modulation ----
    h1 = conv3x3(x1, w1_ref)                                       # (Co, L)
    h1 = h1 * chan_ref[:, 0:1] + nw1 * noise_ref[0:1, :] + chan_ref[:, 1:2]
    h1 = jnp.maximum(h1, 0.2 * h1)
    x2 = h1 * lanes(mods[off_c2:off_c2 + Co])

    # ---- 6) conv2: same epilogue -> block "hidden" output ----
    h2 = conv3x3(x2, w2_ref)
    h2 = h2 * chan_ref[:, 2:3] + nw2 * noise_ref[1:2, :] + chan_ref[:, 3:4]
    h2 = jnp.maximum(h2, 0.2 * h2)

    # ---- 7) to_img: 1x1 modulated conv (no demod) + bias ----
    xi = h2 * lanes(mods[off_img:off_img + Co])
    img = jnp.dot(wimg_ref[...], xi, preferred_element_type=f32) + bimg_ref[...]

    # ---- 8) store per batch (lane slices at N2 boundaries) ----
    for b in range(B):
        hid_ref[b] = h2[:, b * N2:(b + 1) * N2]
        img_ref[b] = img[:, b * N2:(b + 1) * N2]


# --------------------------------------------------------------------------
# Wrapper: parameter prep + input layout plumbing + single pallas_call.
# --------------------------------------------------------------------------
def mobile_synthesis_block_forward(hidden, style, noise1, noise2, params):
    B, C4, H, W = hidden.shape
    C = C4 // 4
    H2, W2 = 2 * H, 2 * W
    N2 = H2 * W2
    L = B * N2
    Co = params["w1"].shape[0]
    Cimg = params["w_img"].shape[0]
    S = style.shape[1]
    # In-kernel boundary masks use bit tricks on the flat spatial index.
    assert (H2 & (H2 - 1)) == 0 and (W2 & (W2 - 1)) == 0, "spatial dims must be pow2"

    f32 = jnp.float32
    scale1 = 1.0 / math.sqrt(C * 9)
    scale2 = 1.0 / math.sqrt(Co * 9)
    scale_img = 1.0 / math.sqrt(Co)

    # ---- fused style-modulation Linear (transposed, 8-row-aligned blocks) ----
    def ru8(n):
        return ((n + 7) // 8) * 8

    def pad_rows(m, rows):
        p = rows - m.shape[0]
        if p == 0:
            return m
        return jnp.concatenate([m, jnp.zeros((p,) + m.shape[1:], m.dtype)], axis=0)

    up_blk = ru8(C)
    off_c1 = 4 * up_blk
    off_c2 = off_c1 + ru8(C)
    off_img = off_c2 + ru8(Co)

    # IDWTUpsaplme channel layout: x[:, :C] = LL; x[:, C:].view(B, C, 3, H, W)
    # -> channel c's (LH, HL, HH) live at hidden channels C+3c, C+3c+1, C+3c+2.
    hi = C + 3 * jnp.arange(C)
    sub_idx = [jnp.arange(C), hi, hi + 1, hi + 2]

    w_blocks, b_blocks = [], []
    for idx in sub_idx:
        w_blocks.append(pad_rows(params["mw_up"][idx], up_blk))
        b_blocks.append(pad_rows(params["mb_up"][idx][:, None], up_blk))
    for mw, mb, sc, rows in (
        (params["mw_c1"], params["mb_c1"], scale1, ru8(C)),
        (params["mw_c2"], params["mb_c2"], scale2, ru8(Co)),
        (params["mw_img"], params["mb_img"], scale_img, ru8(Co)),
    ):
        w_blocks.append(pad_rows(sc * mw, rows))
        b_blocks.append(pad_rows(sc * mb[:, None], rows))
    w_mod = jnp.concatenate(w_blocks, axis=0).astype(f32)     # (rows_tot, S)
    b_mod = jnp.concatenate(b_blocks, axis=0).astype(f32)     # (rows_tot, 1)

    # ---- batch-independent demodulation + packed per-channel constants ----
    def demod(w, style_inv, sc):
        t = sc * style_inv[None, :, None, None] * w
        return lax.rsqrt(jnp.sum(t * t, axis=(1, 2, 3)) + 1e-8)

    chan = jnp.stack(
        [demod(params["w1"], params["style_inv1"], scale1), params["b1"],
         demod(params["w2"], params["style_inv2"], scale2), params["b2"]],
        axis=1)                                               # (Co, 4)

    # ---- conv weights as 9 taps (t = (dy+1)*3 + (dx+1)), 1x1 to_img weight ----
    w1_taps = jnp.transpose(params["w1"], (2, 3, 0, 1)).reshape(9, Co, C)
    w2_taps = jnp.transpose(params["w2"], (2, 3, 0, 1)).reshape(9, Co, Co)
    w_img = params["w_img"].reshape(Cimg, Co)
    b_img = params["b_img"][:, None]

    # ---- input layout: subbands replicated onto the upsampled flat grid ----
    ll = hidden[:, :C]
    high = hidden[:, C:].reshape(B, C, 3, H, W)
    hs = jnp.concatenate([ll[:, None], jnp.moveaxis(high, 2, 1)], axis=1)  # (B,4,C,H,W)
    hs = jnp.repeat(jnp.repeat(hs, 2, axis=3), 2, axis=4)                  # (B,4,C,H2,W2)
    x_up = jnp.transpose(hs, (1, 2, 0, 3, 4)).reshape(4, C, L)

    noise = jnp.concatenate([noise1.reshape(1, L), noise2.reshape(1, L)], axis=0)
    nw = jnp.concatenate([params["noise_w1"].reshape(1), params["noise_w2"].reshape(1)])
    style_t = style.T                                                      # (S, B)

    vmem = pl.BlockSpec(memory_space=pltpu.MemorySpace.VMEM)
    smem = pl.BlockSpec(memory_space=pltpu.MemorySpace.SMEM)

    kernel = functools.partial(
        _fused_block_kernel, B=B, C=C, Co=Co, W2=W2, N2=N2,
        up_blk=up_blk, off_c1=off_c1, off_c2=off_c2, off_img=off_img)

    # NOTE: single grid-less call; at larger resolutions add a spatial grid +
    # vmem_limit_bytes (see review), not needed at 16x16.
    hid, img = pl.pallas_call(
        kernel,
        out_shape=(jax.ShapeDtypeStruct((B, Co, N2), f32),
                   jax.ShapeDtypeStruct((B, Cimg, N2), f32)),
        in_specs=[smem] + [vmem] * 10,
        out_specs=(vmem, vmem),
    )(nw, style_t, w_mod, b_mod, x_up, w1_taps, w2_taps, w_img, chan, b_img, noise)

    return hid.reshape(B, Co, H2, W2), img.reshape(B, Cimg, H2, W2)


# --------------------------------------------------------------------------
# Pure-JAX reference (independent conv path via lax.conv_general_dilated).
# --------------------------------------------------------------------------
def _reference_forward(hidden, style, noise1, noise2, params):
    B, C4, H, W = hidden.shape
    C = C4 // 4
    Co = params["w1"].shape[0]
    hp = lax.Precision.HIGHEST

    def linear(x, w, b):
        return jnp.dot(x, w.T, precision=hp) + b

    mod_up = linear(style, params["mw_up"], params["mb_up"])
    xm = hidden * mod_up[:, :, None, None]
    ll = xm[:, :C]
    high = xm[:, C:].reshape(B, C, 3, H, W)          # channel-major, band-minor
    lh, hl, hh = high[:, :, 0], high[:, :, 1], high[:, :, 2]
    y00 = 0.5 * (ll + lh + hl + hh)
    y01 = 0.5 * (ll + lh - hl - hh)
    y10 = 0.5 * (ll - lh + hl - hh)
    y11 = 0.5 * (ll - lh - hl + hh)
    q = jnp.stack([y00, y01, y10, y11], axis=1).reshape(B, 2, 2, C, H, W)
    up = jnp.transpose(q, (0, 3, 4, 1, 5, 2)).reshape(B, C, 2 * H, 2 * W)

    def styled_conv(x, w, style_inv, mw, mb, bias, noise_w, noise, k):
        cin = w.shape[1]
        scale = 1.0 / math.sqrt(cin * k * k)
        mod = scale * linear(style, mw, mb)
        x = mod[:, :, None, None] * x
        pad = k // 2
        y = lax.conv_general_dilated(
            x, w, (1, 1), [(pad, pad), (pad, pad)],
            dimension_numbers=("NCHW", "OIHW", "NCHW"), precision=hp)
        t = scale * style_inv[None, :, None, None] * w
        demod = lax.rsqrt(jnp.sum(t * t, axis=(1, 2, 3)) + 1e-8)
        y = y * demod[None, :, None, None]
        y = y + noise_w[0, 0] * noise
        y = y + bias[None, :, None, None]
        return jnp.where(y >= 0, y, 0.2 * y)

    h1 = styled_conv(up, params["w1"], params["style_inv1"], params["mw_c1"],
                     params["mb_c1"], params["b1"], params["noise_w1"], noise1, 3)
    h2 = styled_conv(h1, params["w2"], params["style_inv2"], params["mw_c2"],
                     params["mb_c2"], params["b2"], params["noise_w2"], noise2, 3)

    scale_img = 1.0 / math.sqrt(Co)
    mod_img = scale_img * linear(style, params["mw_img"], params["mb_img"])
    xi = mod_img[:, :, None, None] * h2
    img = lax.conv_general_dilated(
        xi, params["w_img"], (1, 1), [(0, 0), (0, 0)],
        dimension_numbers=("NCHW", "OIHW", "NCHW"), precision=hp)
    img = img + params["b_img"][None, :, None, None]
    return h2, img


if __name__ == "__main__":
    key = jax.random.PRNGKey(0)
    keys = jax.random.split(key, 16)

    B = 2
    channels_in = 16           # -> 4 channels after IDWT upsample
    channels_out = 8
    style_dim = 16
    H = W = 8                  # upsampled to 16x16 (flattened lane axis = 512)
    Cimg = 12
    C = channels_in // 4

    def randn(k, shape, s=1.0):
        return s * jax.random.normal(k, shape, dtype=jnp.float32)

    params = {
        "mw_up":  randn(keys[0], (channels_in, style_dim), 0.1),
        "mb_up":  jnp.ones((channels_in,), jnp.float32),
        "mw_c1":  randn(keys[1], (C, style_dim), 0.1),
        "mb_c1":  jnp.ones((C,), jnp.float32),
        "mw_c2":  randn(keys[2], (channels_out, style_dim), 0.1),
        "mb_c2":  jnp.ones((channels_out,), jnp.float32),
        "mw_img": randn(keys[3], (channels_out, style_dim), 0.1),
        "mb_img": jnp.ones((channels_out,), jnp.float32),
        "w1": randn(keys[4], (channels_out, C, 3, 3)),
        "style_inv1": randn(keys[5], (C,)),
        "b1": jnp.zeros((channels_out,), jnp.float32),
        "noise_w1": randn(keys[6], (1, 1), 0.1),
        "w2": randn(keys[7], (channels_out, channels_out, 3, 3)),
        "style_inv2": randn(keys[8], (channels_out,)),
        "b2": jnp.zeros((channels_out,), jnp.float32),
        "noise_w2": randn(keys[9], (1, 1), 0.1),
        "w_img": randn(keys[10], (Cimg, channels_out, 1, 1)),
        "b_img": jnp.zeros((Cimg,), jnp.float32),
    }

    hidden = randn(keys[11], (B, channels_in, H, W))
    style = randn(keys[12], (B, style_dim))
    # Explicit noise (the PyTorch forward samples it when noise=None).
    noise1 = randn(keys[13], (B, 1, 2 * H, 2 * W))
    noise2 = randn(keys[14], (B, 1, 2 * H, 2 * W))

    fwd = jax.jit(mobile_synthesis_block_forward)
    hid, img = fwd(hidden, style, noise1, noise2, params)
    hid = jax.block_until_ready(hid)
    img = jax.block_until_ready(img)

    ref_hid, ref_img = _reference_forward(hidden, style, noise1, noise2, params)

    assert hid.shape == (B, channels_out, 2 * H, 2 * W)
    assert img.shape == (B, Cimg, 2 * H, 2 * W)

    def close(a, b):
        return bool(jnp.max(jnp.abs(a - b)) <= 1e-3 * (1.0 + jnp.max(jnp.abs(b))))

    assert close(hid, ref_hid), "hidden mismatch vs reference"
    assert close(img, ref_img), "img mismatch vs reference"

    print("KERNEL_OK")
</pallas_src>

<mosaic_0001>
module attributes {stable_mosaic.version = 11 : i64} {
  func.func @_fused_block_kernel(%arg0: memref<2xf32, #tpu.memory_space<smem>>, %arg1: memref<16x2xf32, #tpu.memory_space<vmem>>, %arg2: memref<56x16xf32, #tpu.memory_space<vmem>>, %arg3: memref<56x1xf32, #tpu.memory_space<vmem>>, %arg4: memref<4x4x512xf32, #tpu.memory_space<vmem>>, %arg5: memref<9x8x4xf32, #tpu.memory_space<vmem>>, %arg6: memref<9x8x8xf32, #tpu.memory_space<vmem>>, %arg7: memref<12x8xf32, #tpu.memory_space<vmem>>, %arg8: memref<8x4xf32, #tpu.memory_space<vmem>>, %arg9: memref<12x1xf32, #tpu.memory_space<vmem>>, %arg10: memref<2x512xf32, #tpu.memory_space<vmem>>, %arg11: memref<2x8x256xf32, #tpu.memory_space<vmem>>, %arg12: memref<2x12x256xf32, #tpu.memory_space<vmem>>) attributes {dimension_semantics = [], scalar_prefetch = 0 : i64, scratch_operands = 0 : i64, tpu.core_type = #tpu.core_type<tc>} {
    %c0 = arith.constant 0 : index
    %c0_0 = arith.constant 0 : index
    %0 = vector.load %arg2[%c0, %c0_0] : memref<56x16xf32, #tpu.memory_space<vmem>>, vector<56x16xf32>
    %c0_1 = arith.constant 0 : index
    %c0_2 = arith.constant 0 : index
    %1 = vector.load %arg1[%c0_1, %c0_2] : memref<16x2xf32, #tpu.memory_space<vmem>>, vector<16x2xf32>
    %cst = arith.constant dense<0.000000e+00> : vector<56x2xf32>
    %2 = tpu.matmul %0, %1, %cst {dimension_numbers = #tpu.dot_dimension_numbers<[1], [0], [0], [1], [0, 0, 1, 1], [], []>} : vector<56x16xf32>, vector<16x2xf32>, vector<56x2xf32> -> vector<56x2xf32>
    %c0_3 = arith.constant 0 : index
    %c0_4 = arith.constant 0 : index
    %3 = vector.load %arg3[%c0_3, %c0_4] : memref<56x1xf32, #tpu.memory_space<vmem>>, vector<56x1xf32>
    %4 = vector.broadcast %3 : vector<56x1xf32> to vector<56x2xf32>
    %5 = arith.addf %2, %4 : vector<56x2xf32>
    %6 = tpu.iota {dimensions = array<i32: 1>} : vector<1x512xi32>
    %c15_i32 = arith.constant 15 : i32
    %7 = vector.broadcast %c15_i32 : i32 to vector<1x512xi32>
    %8 = arith.andi %6, %7 : vector<1x512xi32>
    %c255_i32 = arith.constant 255 : i32
    %9 = vector.broadcast %c255_i32 : i32 to vector<1x512xi32>
    %10 = arith.andi %6, %9 : vector<1x512xi32>
    %c0_i32 = arith.constant 0 : i32
    %11 = vector.broadcast %c0_i32 : i32 to vector<1x512xi32>
    %12 = arith.cmpi ne, %8, %11 : vector<1x512xi32>
    %c15_i32_5 = arith.constant 15 : i32
    %13 = vector.broadcast %c15_i32_5 : i32 to vector<1x512xi32>
    %14 = arith.cmpi ne, %8, %13 : vector<1x512xi32>
    %c16_i32 = arith.constant 16 : i32
    %15 = vector.broadcast %c16_i32 : i32 to vector<1x512xi32>
    %16 = arith.cmpi sge, %10, %15 : vector<1x512xi32>
    %c240_i32 = arith.constant 240 : i32
    %17 = vector.broadcast %c240_i32 : i32 to vector<1x512xi32>
    %18 = arith.cmpi slt, %10, %17 : vector<1x512xi32>
    %c1_i32 = arith.constant 1 : i32
    %19 = vector.broadcast %c1_i32 : i32 to vector<1x512xi32>
    %20 = arith.andi %6, %19 : vector<1x512xi32>
    %c0_i32_6 = arith.constant 0 : i32
    %21 = vector.broadcast %c0_i32_6 : i32 to vector<1x512xi32>
    %22 = arith.cmpi eq, %20, %21 : vector<1x512xi32>
    %cst_7 = arith.constant 1.000000e+00 : f32
    %cst_8 = arith.constant -1.000000e+00 : f32
    %23 = vector.broadcast %cst_7 : f32 to vector<1x512xf32>
    %24 = vector.broadcast %cst_8 : f32 to vector<1x512xf32>
    %25 = arith.select %22, %23, %24 : vector<1x512xi1>, vector<1x512xf32>
    %c16_i32_9 = arith.constant 16 : i32
    %26 = vector.broadcast %c16_i32_9 : i32 to vector<1x512xi32>
    %27 = arith.andi %6, %26 : vector<1x512xi32>
    %c0_i32_10 = arith.constant 0 : i32
    %28 = vector.broadcast %c0_i32_10 : i32 to vector<1x512xi32>
    %29 = arith.cmpi eq, %27, %28 : vector<1x512xi32>
    %cst_11 = arith.constant 1.000000e+00 : f32
    %cst_12 = arith.constant -1.000000e+00 : f32
    %30 = vector.broadcast %cst_11 : f32 to vector<1x512xf32>
    %31 = vector.broadcast %cst_12 : f32 to vector<1x512xf32>
    %32 = arith.select %29, %30, %31 : vector<1x512xi1>, vector<1x512xf32>
    %c0_13 = arith.constant 0 : index
    %c0_14 = arith.constant 0 : index
    %c0_15 = arith.constant 0 : index
    %33 = vector.load %arg4[%c0_13, %c0_14, %c0_15] : memref<4x4x512xf32, #tpu.memory_space<vmem>>, vector<1x4x512xf32>
    %34 = vector.shape_cast %33 : vector<1x4x512xf32> to vector<4x512xf32>
    %35 = vector.extract_strided_slice %5 {offsets = [0, 0], sizes = [4, 2], strides = [1, 1]} : vector<56x2xf32> to vector<4x2xf32>
    %36 = vector.extract_strided_slice %35 {offsets = [0, 0], sizes = [4, 1], strides = [1, 1]} : vector<4x2xf32> to vector<4x1xf32>
    %37 = vector.shape_cast %36 : vector<4x1xf32> to vector<4x1xf32>
    %38 = vector.broadcast %37 : vector<4x1xf32> to vector<4x256xf32>
    %39 = vector.extract_strided_slice %35 {offsets = [0, 1], sizes = [4, 1], strides = [1, 1]} : vector<4x2xf32> to vector<4x1xf32>
    %40 = vector.shape_cast %39 : vector<4x1xf32> to vector<4x1xf32>
    %41 = vector.broadcast %40 : vector<4x1xf32> to vector<4x256xf32>
    %42 = tpu.concatenate %38, %41 in 1 : vector<4x256xf32>, vector<4x256xf32> -> vector<4x512xf32>
    %43 = arith.mulf %34, %42 : vector<4x512xf32>
    %c1 = arith.constant 1 : index
    %c0_16 = arith.constant 0 : index
    %c0_17 = arith.constant 0 : index
    %44 = vector.load %arg4[%c1, %c0_16, %c0_17] : memref<4x4x512xf32, #tpu.memory_space<vmem>>, vector<1x4x512xf32>
    %45 = vector.shape_cast %44 : vector<1x4x512xf32> to vector<4x512xf32>
    %46 = vector.extract_strided_slice %5 {offsets = [8, 0], sizes = [4, 2], strides = [1, 1]} : vector<56x2xf32> to vector<4x2xf32>
    %47 = vector.extract_strided_slice %46 {offsets = [0, 0], sizes = [4, 1], strides = [1, 1]} : vector<4x2xf32> to vector<4x1xf32>
    %48 = vector.shape_cast %47 : vector<4x1xf32> to vector<4x1xf32>
    %49 = vector.broadcast %48 : vector<4x1xf32> to vector<4x256xf32>
    %50 = vector.extract_strided_slice %46 {offsets = [0, 1], sizes = [4, 1], strides = [1, 1]} : vector<4x2xf32> to vector<4x1xf32>
    %51 = vector.shape_cast %50 : vector<4x1xf32> to vector<4x1xf32>
    %52 = vector.broadcast %51 : vector<4x1xf32> to vector<4x256xf32>
    %53 = tpu.concatenate %49, %52 in 1 : vector<4x256xf32>, vector<4x256xf32> -> vector<4x512xf32>
    %54 = arith.mulf %45, %53 : vector<4x512xf32>
    %c2 = arith.constant 2 : index
    %c0_18 = arith.constant 0 : index
    %c0_19 = arith.constant 0 : index
    %55 = vector.load %arg4[%c2, %c0_18, %c0_19] : memref<4x4x512xf32, #tpu.memory_space<vmem>>, vector<1x4x512xf32>
    %56 = vector.shape_cast %55 : vector<1x4x512xf32> to vector<4x512xf32>
    %57 = vector.extract_strided_slice %5 {offsets = [16, 0], sizes = [4, 2], strides = [1, 1]} : vector<56x2xf32> to vector<4x2xf32>
    %58 = vector.extract_strided_slice %57 {offsets = [0, 0], sizes = [4, 1], strides = [1, 1]} : vector<4x2xf32> to vector<4x1xf32>
    %59 = vector.shape_cast %58 : vector<4x1xf32> to vector<4x1xf32>
    %60 = vector.broadcast %59 : vector<4x1xf32> to vector<4x256xf32>
    %61 = vector.extract_strided_slice %57 {offsets = [0, 1], sizes = [4, 1], strides = [1, 1]} : vector<4x2xf32> to vector<4x1xf32>
    %62 = vector.shape_cast %61 : vector<4x1xf32> to vector<4x1xf32>
    %63 = vector.broadcast %62 : vector<4x1xf32> to vector<4x256xf32>
    %64 = tpu.concatenate %60, %63 in 1 : vector<4x256xf32>, vector<4x256xf32> -> vector<4x512xf32>
    %65 = arith.mulf %56, %64 : vector<4x512xf32>
    %c3 = arith.constant 3 : index
    %c0_20 = arith.constant 0 : index
    %c0_21 = arith.constant 0 : index
    %66 = vector.load %arg4[%c3, %c0_20, %c0_21] : memref<4x4x512xf32, #tpu.memory_space<vmem>>, vector<1x4x512xf32>
    %67 = vector.shape_cast %66 : vector<1x4x512xf32> to vector<4x512xf32>
    %68 = vector.extract_strided_slice %5 {offsets = [24, 0], sizes = [4, 2], strides = [1, 1]} : vector<56x2xf32> to vector<4x2xf32>
    %69 = vector.extract_strided_slice %68 {offsets = [0, 0], sizes = [4, 1], strides = [1, 1]} : vector<4x2xf32> to vector<4x1xf32>
    %70 = vector.shape_cast %69 : vector<4x1xf32> to vector<4x1xf32>
    %71 = vector.broadcast %70 : vector<4x1xf32> to vector<4x256xf32>
    %72 = vector.extract_strided_slice %68 {offsets = [0, 1], sizes = [4, 1], strides = [1, 1]} : vector<4x2xf32> to vector<4x1xf32>
    %73 = vector.shape_cast %72 : vector<4x1xf32> to vector<4x1xf32>
    %74 = vector.broadcast %73 : vector<4x1xf32> to vector<4x256xf32>
    %75 = tpu.concatenate %71, %74 in 1 : vector<4x256xf32>, vector<4x256xf32> -> vector<4x512xf32>
    %76 = arith.mulf %67, %75 : vector<4x512xf32>
    %77 = vector.broadcast %25 : vector<1x512xf32> to vector<4x512xf32>
    %78 = arith.mulf %77, %65 : vector<4x512xf32>
    %79 = arith.addf %43, %78 : vector<4x512xf32>
    %80 = vector.broadcast %25 : vector<1x512xf32> to vector<4x512xf32>
    %81 = arith.mulf %80, %76 : vector<4x512xf32>
    %82 = arith.addf %54, %81 : vector<4x512xf32>
    %83 = vector.broadcast %32 : vector<1x512xf32> to vector<4x512xf32>
    %84 = arith.mulf %83, %82 : vector<4x512xf32>
    %85 = arith.addf %79, %84 : vector<4x512xf32>
    %86 = vector.extract_strided_slice %5 {offsets = [32, 0], sizes = [4, 2], strides = [1, 1]} : vector<56x2xf32> to vector<4x2xf32>
    %87 = vector.extract_strided_slice %86 {offsets = [0, 0], sizes = [4, 1], strides = [1, 1]} : vector<4x2xf32> to vector<4x1xf32>
    %88 = vector.shape_cast %87 : vector<4x1xf32> to vector<4x1xf32>
    %89 = vector.broadcast %88 : vector<4x1xf32> to vector<4x256xf32>
    %90 = vector.extract_strided_slice %86 {offsets = [0, 1], sizes = [4, 1], strides = [1, 1]} : vector<4x2xf32> to vector<4x1xf32>
    %91 = vector.shape_cast %90 : vector<4x1xf32> to vector<4x1xf32>
    %92 = vector.broadcast %91 : vector<4x1xf32> to vector<4x256xf32>
    %93 = tpu.concatenate %89, %92 in 1 : vector<4x256xf32>, vector<4x256xf32> -> vector<4x512xf32>
    %cst_22 = arith.constant 5.000000e-01 : f32
    %94 = vector.broadcast %cst_22 : f32 to vector<4x512xf32>
    %95 = arith.mulf %94, %93 : vector<4x512xf32>
    %96 = arith.mulf %95, %85 : vector<4x512xf32>
    %c0_23 = arith.constant 0 : index
    %97 = memref.load %arg0[%c0_23] : memref<2xf32, #tpu.memory_space<smem>>
    %c1_24 = arith.constant 1 : index
    %98 = memref.load %arg0[%c1_24] : memref<2xf32, #tpu.memory_space<smem>>
    %99 = vector.extract_strided_slice %96 {offsets = [0, 495], sizes = [4, 17], strides = [1, 1]} : vector<4x512xf32> to vector<4x17xf32>
    %100 = vector.extract_strided_slice %96 {offsets = [0, 0], sizes = [4, 495], strides = [1, 1]} : vector<4x512xf32> to vector<4x495xf32>
    %101 = tpu.concatenate %99, %100 in 1 : vector<4x17xf32>, vector<4x495xf32> -> vector<4x512xf32>
    %102 = arith.andi %16, %12 : vector<1x512xi1>
    %cst_25 = arith.constant 0.000000e+00 : f32
    %103 = vector.shape_cast %102 : vector<1x512xi1> to vector<1x512xi1>
    %104 = vector.broadcast %103 : vector<1x512xi1> to vector<4x512xi1>
    %105 = vector.broadcast %cst_25 : f32 to vector<4x512xf32>
    %106 = arith.select %104, %101, %105 : vector<4x512xi1>, vector<4x512xf32>
    %c0_26 = arith.constant 0 : index
    %c0_27 = arith.constant 0 : index
    %c0_28 = arith.constant 0 : index
    %107 = vector.load %arg5[%c0_26, %c0_27, %c0_28] : memref<9x8x4xf32, #tpu.memory_space<vmem>>, vector<1x8x4xf32>
    %108 = vector.shape_cast %107 : vector<1x8x4xf32> to vector<8x4xf32>
    %cst_29 = arith.constant dense<0.000000e+00> : vector<8x512xf32>
    %109 = tpu.matmul %108, %106, %cst_29 {dimension_numbers = #tpu.dot_dimension_numbers<[1], [0], [0], [1], [0, 0, 1, 1], [], []>} : vector<8x4xf32>, vector<4x512xf32>, vector<8x512xf32> -> vector<8x512xf32>
    %110 = vector.extract_strided_slice %96 {offsets = [0, 496], sizes = [4, 16], strides = [1, 1]} : vector<4x512xf32> to vector<4x16xf32>
    %111 = vector.extract_strided_slice %96 {offsets = [0, 0], sizes = [4, 496], strides = [1, 1]} : vector<4x512xf32> to vector<4x496xf32>
    %112 = tpu.concatenate %110, %111 in 1 : vector<4x16xf32>, vector<4x496xf32> -> vector<4x512xf32>
    %cst_30 = arith.constant 0.000000e+00 : f32
    %113 = vector.shape_cast %16 : vector<1x512xi1> to vector<1x512xi1>
    %114 = vector.broadcast %113 : vector<1x512xi1> to vector<4x512xi1>
    %115 = vector.broadcast %cst_30 : f32 to vector<4x512xf32>
    %116 = arith.select %114, %112, %115 : vector<4x512xi1>, vector<4x512xf32>
    %c1_31 = arith.constant 1 : index
    %c0_32 = arith.constant 0 : index
    %c0_33 = arith.constant 0 : index
    %117 = vector.load %arg5[%c1_31, %c0_32, %c0_33] : memref<9x8x4xf32, #tpu.memory_space<vmem>>, vector<1x8x4xf32>
    %118 = vector.shape_cast %117 : vector<1x8x4xf32> to vector<8x4xf32>
    %cst_34 = arith.constant dense<0.000000e+00> : vector<8x512xf32>
    %119 = tpu.matmul %118, %116, %cst_34 {dimension_numbers = #tpu.dot_dimension_numbers<[1], [0], [0], [1], [0, 0, 1, 1], [], []>} : vector<8x4xf32>, vector<4x512xf32>, vector<8x512xf32> -> vector<8x512xf32>
    %120 = arith.addf %109, %119 : vector<8x512xf32>
    %121 = vector.extract_strided_slice %96 {offsets = [0, 497], sizes = [4, 15], strides = [1, 1]} : vector<4x512xf32> to vector<4x15xf32>
    %122 = vector.extract_strided_slice %96 {offsets = [0, 0], sizes = [4, 497], strides = [1, 1]} : vector<4x512xf32> to vector<4x497xf32>
    %123 = tpu.concatenate %121, %122 in 1 : vector<4x15xf32>, vector<4x497xf32> -> vector<4x512xf32>
    %124 = arith.andi %16, %14 : vector<1x512xi1>
    %cst_35 = arith.constant 0.000000e+00 : f32
    %125 = vector.shape_cast %124 : vector<1x512xi1> to vector<1x512xi1>
    %126 = vector.broadcast %125 : vector<1x512xi1> to vector<4x512xi1>
    %127 = vector.broadcast %cst_35 : f32 to vector<4x512xf32>
    %128 = arith.select %126, %123, %127 : vector<4x512xi1>, vector<4x512xf32>
    %c2_36 = arith.constant 2 : index
    %c0_37 = arith.constant 0 : index
    %c0_38 = arith.constant 0 : index
    %129 = vector.load %arg5[%c2_36, %c0_37, %c0_38] : memref<9x8x4xf32, #tpu.memory_space<vmem>>, vector<1x8x4xf32>
    %130 = vector.shape_cast %129 : vector<1x8x4xf32> to vector<8x4xf32>
    %cst_39 = arith.constant dense<0.000000e+00> : vector<8x512xf32>
    %131 = tpu.matmul %130, %128, %cst_39 {dimension_numbers = #tpu.dot_dimension_numbers<[1], [0], [0], [1], [0, 0, 1, 1], [], []>} : vector<8x4xf32>, vector<4x512xf32>, vector<8x512xf32> -> vector<8x512xf32>
    %132 = arith.addf %120, %131 : vector<8x512xf32>
    %133 = vector.extract_strided_slice %96 {offsets = [0, 511], sizes = [4, 1], strides = [1, 1]} : vector<4x512xf32> to vector<4x1xf32>
    %134 = vector.extract_strided_slice %96 {offsets = [0, 0], sizes = [4, 511], strides = [1, 1]} : vector<4x512xf32> to vector<4x511xf32>
    %135 = tpu.concatenate %133, %134 in 1 : vector<4x1xf32>, vector<4x511xf32> -> vector<4x512xf32>
    %cst_40 = arith.constant 0.000000e+00 : f32
    %136 = vector.shape_cast %12 : vector<1x512xi1> to vector<1x512xi1>
    %137 = vector.broadcast %136 : vector<1x512xi1> to vector<4x512xi1>
    %138 = vector.broadcast %cst_40 : f32 to vector<4x512xf32>
    %139 = arith.select %137, %135, %138 : vector<4x512xi1>, vector<4x512xf32>
    %c3_41 = arith.constant 3 : index
    %c0_42 = arith.constant 0 : index
    %c0_43 = arith.constant 0 : index
    %140 = vector.load %arg5[%c3_41, %c0_42, %c0_43] : memref<9x8x4xf32, #tpu.memory_space<vmem>>, vector<1x8x4xf32>
    %141 = vector.shape_cast %140 : vector<1x8x4xf32> to vector<8x4xf32>
    %cst_44 = arith.constant dense<0.000000e+00> : vector<8x512xf32>
    %142 = tpu.matmul %141, %139, %cst_44 {dimension_numbers = #tpu.dot_dimension_numbers<[1], [0], [0], [1], [0, 0, 1, 1], [], []>} : vector<8x4xf32>, vector<4x512xf32>, vector<8x512xf32> -> vector<8x512xf32>
    %143 = arith.addf %132, %142 : vector<8x512xf32>
    %c4 = arith.constant 4 : index
    %c0_45 = arith.constant 0 : index
    %c0_46 = arith.constant 0 : index
    %144 = vector.load %arg5[%c4, %c0_45, %c0_46] : memref<9x8x4xf32, #tpu.memory_space<vmem>>, vector<1x8x4xf32>
    %145 = vector.shape_cast %144 : vector<1x8x4xf32> to vector<8x4xf32>
    %cst_47 = arith.constant dense<0.000000e+00> : vector<8x512xf32>
    %146 = tpu.matmul %145, %96, %cst_47 {dimension_numbers = #tpu.dot_dimension_numbers<[1], [0], [0], [1], [0, 0, 1, 1], [], []>} : vector<8x4xf32>, vector<4x512xf32>, vector<8x512xf32> -> vector<8x512xf32>
    %147 = arith.addf %143, %146 : vector<8x512xf32>
    %148 = vector.extract_strided_slice %96 {offsets = [0, 1], sizes = [4, 511], strides = [1, 1]} : vector<4x512xf32> to vector<4x511xf32>
    %149 = vector.extract_strided_slice %96 {offsets = [0, 0], sizes = [4, 1], strides = [1, 1]} : vector<4x512xf32> to vector<4x1xf32>
    %150 = tpu.concatenate %148, %149 in 1 : vector<4x511xf32>, vector<4x1xf32> -> vector<4x512xf32>
    %cst_48 = arith.constant 0.000000e+00 : f32
    %151 = vector.shape_cast %14 : vector<1x512xi1> to vector<1x512xi1>
    %152 = vector.broadcast %151 : vector<1x512xi1> to vector<4x512xi1>
    %153 = vector.broadcast %cst_48 : f32 to vector<4x512xf32>
    %154 = arith.select %152, %150, %153 : vector<4x512xi1>, vector<4x512xf32>
    %c5 = arith.constant 5 : index
    %c0_49 = arith.constant 0 : index
    %c0_50 = arith.constant 0 : index
    %155 = vector.load %arg5[%c5, %c0_49, %c0_50] : memref<9x8x4xf32, #tpu.memory_space<vmem>>, vector<1x8x4xf32>
    %156 = vector.shape_cast %155 : vector<1x8x4xf32> to vector<8x4xf32>
    %cst_51 = arith.constant dense<0.000000e+00> : vector<8x512xf32>
    %157 = tpu.matmul %156, %154, %cst_51 {dimension_numbers = #tpu.dot_dimension_numbers<[1], [0], [0], [1], [0, 0, 1, 1], [], []>} : vector<8x4xf32>, vector<4x512xf32>, vector<8x512xf32> -> vector<8x512xf32>
    %158 = arith.addf %147, %157 : vector<8x512xf32>
    %159 = vector.extract_strided_slice %96 {offsets = [0, 15], sizes = [4, 497], strides = [1, 1]} : vector<4x512xf32> to vector<4x497xf32>
    %160 = vector.extract_strided_slice %96 {offsets = [0, 0], sizes = [4, 15], strides = [1, 1]} : vector<4x512xf32> to vector<4x15xf32>
    %161 = tpu.concatenate %159, %160 in 1 : vector<4x497xf32>, vector<4x15xf32> -> vector<4x512xf32>
    %162 = arith.andi %18, %12 : vector<1x512xi1>
    %cst_52 = arith.constant 0.000000e+00 : f32
    %163 = vector.shape_cast %162 : vector<1x512xi1> to vector<1x512xi1>
    %164 = vector.broadcast %163 : vector<1x512xi1> to vector<4x512xi1>
    %165 = vector.broadcast %cst_52 : f32 to vector<4x512xf32>
    %166 = arith.select %164, %161, %165 : vector<4x512xi1>, vector<4x512xf32>
    %c6 = arith.constant 6 : index
    %c0_53 = arith.constant 0 : index
    %c0_54 = arith.constant 0 : index
    %167 = vector.load %arg5[%c6, %c0_53, %c0_54] : memref<9x8x4xf32, #tpu.memory_space<vmem>>, vector<1x8x4xf32>
    %168 = vector.shape_cast %167 : vector<1x8x4xf32> to vector<8x4xf32>
    %cst_55 = arith.constant dense<0.000000e+00> : vector<8x512xf32>
    %169 = tpu.matmul %168, %166, %cst_55 {dimension_numbers = #tpu.dot_dimension_numbers<[1], [0], [0], [1], [0, 0, 1, 1], [], []>} : vector<8x4xf32>, vector<4x512xf32>, vector<8x512xf32> -> vector<8x512xf32>
    %170 = arith.addf %158, %169 : vector<8x512xf32>
    %171 = vector.extract_strided_slice %96 {offsets = [0, 16], sizes = [4, 496], strides = [1, 1]} : vector<4x512xf32> to vector<4x496xf32>
    %172 = vector.extract_strided_slice %96 {offsets = [0, 0], sizes = [4, 16], strides = [1, 1]} : vector<4x512xf32> to vector<4x16xf32>
    %173 = tpu.concatenate %171, %172 in 1 : vector<4x496xf32>, vector<4x16xf32> -> vector<4x512xf32>
    %cst_56 = arith.constant 0.000000e+00 : f32
    %174 = vector.shape_cast %18 : vector<1x512xi1> to vector<1x512xi1>
    %175 = vector.broadcast %174 : vector<1x512xi1> to vector<4x512xi1>
    %176 = vector.broadcast %cst_56 : f32 to vector<4x512xf32>
    %177 = arith.select %175, %173, %176 : vector<4x512xi1>, vector<4x512xf32>
    %c7 = arith.constant 7 : index
    %c0_57 = arith.constant 0 : index
    %c0_58 = arith.constant 0 : index
    %178 = vector.load %arg5[%c7, %c0_57, %c0_58] : memref<9x8x4xf32, #tpu.memory_space<vmem>>, vector<1x8x4xf32>
    %179 = vector.shape_cast %178 : vector<1x8x4xf32> to vector<8x4xf32>
    %cst_59 = arith.constant dense<0.000000e+00> : vector<8x512xf32>
    %180 = tpu.matmul %179, %177, %cst_59 {dimension_numbers = #tpu.dot_dimension_numbers<[1], [0], [0], [1], [0, 0, 1, 1], [], []>} : vector<8x4xf32>, vector<4x512xf32>, vector<8x512xf32> -> vector<8x512xf32>
    %181 = arith.addf %170, %180 : vector<8x512xf32>
    %182 = vector.extract_strided_slice %96 {offsets = [0, 17], sizes = [4, 495], strides = [1, 1]} : vector<4x512xf32> to vector<4x495xf32>
    %183 = vector.extract_strided_slice %96 {offsets = [0, 0], sizes = [4, 17], strides = [1, 1]} : vector<4x512xf32> to vector<4x17xf32>
    %184 = tpu.concatenate %182, %183 in 1 : vector<4x495xf32>, vector<4x17xf32> -> vector<4x512xf32>
    %185 = arith.andi %18, %14 : vector<1x512xi1>
    %cst_60 = arith.constant 0.000000e+00 : f32
    %186 = vector.shape_cast %185 : vector<1x512xi1> to vector<1x512xi1>
    %187 = vector.broadcast %186 : vector<1x512xi1> to vector<4x512xi1>
    %188 = vector.broadcast %cst_60 : f32 to vector<4x512xf32>
    %189 = arith.select %187, %184, %188 : vector<4x512xi1>, vector<4x512xf32>
    %c8 = arith.constant 8 : index
    %c0_61 = arith.constant 0 : index
    %c0_62 = arith.constant 0 : index
    %190 = vector.load %arg5[%c8, %c0_61, %c0_62] : memref<9x8x4xf32, #tpu.memory_space<vmem>>, vector<1x8x4xf32>
    %191 = vector.shape_cast %190 : vector<1x8x4xf32> to vector<8x4xf32>
    %cst_63 = arith.constant dense<0.000000e+00> : vector<8x512xf32>
    %192 = tpu.matmul %191, %189, %cst_63 {dimension_numbers = #tpu.dot_dimension_numbers<[1], [0], [0], [1], [0, 0, 1, 1], [], []>} : vector<8x4xf32>, vector<4x512xf32>, vector<8x512xf32> -> vector<8x512xf32>
    %193 = arith.addf %181, %192 : vector<8x512xf32>
    %c0_64 = arith.constant 0 : index
    %c0_65 = arith.constant 0 : index
    %194 = vector.load %arg8[%c0_64, %c0_65] : memref<8x4xf32, #tpu.memory_space<vmem>>, vector<8x1xf32>
    %195 = vector.broadcast %194 : vector<8x1xf32> to vector<8x512xf32>
    %196 = arith.mulf %193, %195 : vector<8x512xf32>
    %c0_66 = arith.constant 0 : index
    %c0_67 = arith.constant 0 : index
    %197 = vector.load %arg10[%c0_66, %c0_67] : memref<2x512xf32, #tpu.memory_space<vmem>>, vector<1x512xf32>
    %198 = vector.broadcast %97 : f32 to vector<1x512xf32>
    %199 = arith.mulf %198, %197 : vector<1x512xf32>
    %200 = vector.broadcast %199 : vector<1x512xf32> to vector<8x512xf32>
    %201 = arith.addf %196, %200 : vector<8x512xf32>
    %c0_68 = arith.constant 0 : index
    %c1_69 = arith.constant 1 : index
    %202 = vector.load %arg8[%c0_68, %c1_69] : memref<8x4xf32, #tpu.memory_space<vmem>>, vector<8x1xf32>
    %203 = vector.broadcast %202 : vector<8x1xf32> to vector<8x512xf32>
    %204 = arith.addf %201, %203 : vector<8x512xf32>
    %cst_70 = arith.constant 2.000000e-01 : f32
    %205 = vector.broadcast %cst_70 : f32 to vector<8x512xf32>
    %206 = arith.mulf %205, %204 : vector<8x512xf32>
    %207 = arith.maximumf %204, %206 : vector<8x512xf32>
    %208 = vector.extract_strided_slice %5 {offsets = [40, 0], sizes = [8, 2], strides = [1, 1]} : vector<56x2xf32> to vector<8x2xf32>
    %209 = vector.extract_strided_slice %208 {offsets = [0, 0], sizes = [8, 1], strides = [1, 1]} : vector<8x2xf32> to vector<8x1xf32>
    %210 = vector.shape_cast %209 : vector<8x1xf32> to vector<8x1xf32>
    %211 = vector.broadcast %210 : vector<8x1xf32> to vector<8x256xf32>
    %212 = vector.extract_strided_slice %208 {offsets = [0, 1], sizes = [8, 1], strides = [1, 1]} : vector<8x2xf32> to vector<8x1xf32>
    %213 = vector.shape_cast %212 : vector<8x1xf32> to vector<8x1xf32>
    %214 = vector.broadcast %213 : vector<8x1xf32> to vector<8x256xf32>
    %215 = tpu.concatenate %211, %214 in 1 : vector<8x256xf32>, vector<8x256xf32> -> vector<8x512xf32>
    %216 = arith.mulf %207, %215 : vector<8x512xf32>
    %217 = vector.extract_strided_slice %216 {offsets = [0, 495], sizes = [8, 17], strides = [1, 1]} : vector<8x512xf32> to vector<8x17xf32>
    %218 = vector.extract_strided_slice %216 {offsets = [0, 0], sizes = [8, 495], strides = [1, 1]} : vector<8x512xf32> to vector<8x495xf32>
    %219 = tpu.concatenate %217, %218 in 1 : vector<8x17xf32>, vector<8x495xf32> -> vector<8x512xf32>
    %220 = arith.andi %16, %12 : vector<1x512xi1>
    %cst_71 = arith.constant 0.000000e+00 : f32
    %221 = vector.shape_cast %220 : vector<1x512xi1> to vector<1x512xi1>
    %222 = vector.broadcast %221 : vector<1x512xi1> to vector<8x512xi1>
    %223 = vector.broadcast %cst_71 : f32 to vector<8x512xf32>
    %224 = arith.select %222, %219, %223 : vector<8x512xi1>, vector<8x512xf32>
    %c0_72 = arith.constant 0 : index
    %c0_73 = arith.constant 0 : index
    %c0_74 = arith.constant 0 : index
    %225 = vector.load %arg6[%c0_72, %c0_73, %c0_74] : memref<9x8x8xf32, #tpu.memory_space<vmem>>, vector<1x8x8xf32>
    %226 = vector.shape_cast %225 : vector<1x8x8xf32> to vector<8x8xf32>
    %cst_75 = arith.constant dense<0.000000e+00> : vector<8x512xf32>
    %227 = tpu.matmul %226, %224, %cst_75 {dimension_numbers = #tpu.dot_dimension_numbers<[1], [0], [0], [1], [0, 0, 1, 1], [], []>} : vector<8x8xf32>, vector<8x512xf32>, vector<8x512xf32> -> vector<8x512xf32>
    %228 = vector.extract_strided_slice %216 {offsets = [0, 496], sizes = [8, 16], strides = [1, 1]} : vector<8x512xf32> to vector<8x16xf32>
    %229 = vector.extract_strided_slice %216 {offsets = [0, 0], sizes = [8, 496], strides = [1, 1]} : vector<8x512xf32> to vector<8x496xf32>
    %230 = tpu.concatenate %228, %229 in 1 : vector<8x16xf32>, vector<8x496xf32> -> vector<8x512xf32>
    %cst_76 = arith.constant 0.000000e+00 : f32
    %231 = vector.shape_cast %16 : vector<1x512xi1> to vector<1x512xi1>
    %232 = vector.broadcast %231 : vector<1x512xi1> to vector<8x512xi1>
    %233 = vector.broadcast %cst_76 : f32 to vector<8x512xf32>
    %234 = arith.select %232, %230, %233 : vector<8x512xi1>, vector<8x512xf32>
    %c1_77 = arith.constant 1 : index
    %c0_78 = arith.constant 0 : index
    %c0_79 = arith.constant 0 : index
    %235 = vector.load %arg6[%c1_77, %c0_78, %c0_79] : memref<9x8x8xf32, #tpu.memory_space<vmem>>, vector<1x8x8xf32>
    %236 = vector.shape_cast %235 : vector<1x8x8xf32> to vector<8x8xf32>
    %cst_80 = arith.constant dense<0.000000e+00> : vector<8x512xf32>
    %237 = tpu.matmul %236, %234, %cst_80 {dimension_numbers = #tpu.dot_dimension_numbers<[1], [0], [0], [1], [0, 0, 1, 1], [], []>} : vector<8x8xf32>, vector<8x512xf32>, vector<8x512xf32> -> vector<8x512xf32>
    %238 = arith.addf %227, %237 : vector<8x512xf32>
    %239 = vector.extract_strided_slice %216 {offsets = [0, 497], sizes = [8, 15], strides = [1, 1]} : vector<8x512xf32> to vector<8x15xf32>
    %240 = vector.extract_strided_slice %216 {offsets = [0, 0], sizes = [8, 497], strides = [1, 1]} : vector<8x512xf32> to vector<8x497xf32>
    %241 = tpu.concatenate %239, %240 in 1 : vector<8x15xf32>, vector<8x497xf32> -> vector<8x512xf32>
    %242 = arith.andi %16, %14 : vector<1x512xi1>
    %cst_81 = arith.constant 0.000000e+00 : f32
    %243 = vector.shape_cast %242 : vector<1x512xi1> to vector<1x512xi1>
    %244 = vector.broadcast %243 : vector<1x512xi1> to vector<8x512xi1>
    %245 = vector.broadcast %cst_81 : f32 to vector<8x512xf32>
    %246 = arith.select %244, %241, %245 : vector<8x512xi1>, vector<8x512xf32>
    %c2_82 = arith.constant 2 : index
    %c0_83 = arith.constant 0 : index
    %c0_84 = arith.constant 0 : index
    %247 = vector.load %arg6[%c2_82, %c0_83, %c0_84] : memref<9x8x8xf32, #tpu.memory_space<vmem>>, vector<1x8x8xf32>
    %248 = vector.shape_cast %247 : vector<1x8x8xf32> to vector<8x8xf32>
    %cst_85 = arith.constant dense<0.000000e+00> : vector<8x512xf32>
    %249 = tpu.matmul %248, %246, %cst_85 {dimension_numbers = #tpu.dot_dimension_numbers<[1], [0], [0], [1], [0, 0, 1, 1], [], []>} : vector<8x8xf32>, vector<8x512xf32>, vector<8x512xf32> -> vector<8x512xf32>
    %250 = arith.addf %238, %249 : vector<8x512xf32>
    %251 = vector.extract_strided_slice %216 {offsets = [0, 511], sizes = [8, 1], strides = [1, 1]} : vector<8x512xf32> to vector<8x1xf32>
    %252 = vector.extract_strided_slice %216 {offsets = [0, 0], sizes = [8, 511], strides = [1, 1]} : vector<8x512xf32> to vector<8x511xf32>
    %253 = tpu.concatenate %251, %252 in 1 : vector<8x1xf32>, vector<8x511xf32> -> vector<8x512xf32>
    %cst_86 = arith.constant 0.000000e+00 : f32
    %254 = vector.shape_cast %12 : vector<1x512xi1> to vector<1x512xi1>
    %255 = vector.broadcast %254 : vector<1x512xi1> to vector<8x512xi1>
    %256 = vector.broadcast %cst_86 : f32 to vector<8x512xf32>
    %257 = arith.select %255, %253, %256 : vector<8x512xi1>, vector<8x512xf32>
    %c3_87 = arith.constant 3 : index
    %c0_88 = arith.constant 0 : index
    %c0_89 = arith.constant 0 : index
    %258 = vector.load %arg6[%c3_87, %c0_88, %c0_89] : memref<9x8x8xf32, #tpu.memory_space<vmem>>, vector<1x8x8xf32>
    %259 = vector.shape_cast %258 : vector<1x8x8xf32> to vector<8x8xf32>
    %cst_90 = arith.constant dense<0.000000e+00> : vector<8x512xf32>
    %260 = tpu.matmul %259, %257, %cst_90 {dimension_numbers = #tpu.dot_dimension_numbers<[1], [0], [0], [1], [0, 0, 1, 1], [], []>} : vector<8x8xf32>, vector<8x512xf32>, vector<8x512xf32> -> vector<8x512xf32>
    %261 = arith.addf %250, %260 : vector<8x512xf32>
    %c4_91 = arith.constant 4 : index
    %c0_92 = arith.constant 0 : index
    %c0_93 = arith.constant 0 : index
    %262 = vector.load %arg6[%c4_91, %c0_92, %c0_93] : memref<9x8x8xf32, #tpu.memory_space<vmem>>, vector<1x8x8xf32>
    %263 = vector.shape_cast %262 : vector<1x8x8xf32> to vector<8x8xf32>
    %cst_94 = arith.constant dense<0.000000e+00> : vector<8x512xf32>
    %264 = tpu.matmul %263, %216, %cst_94 {dimension_numbers = #tpu.dot_dimension_numbers<[1], [0], [0], [1], [0, 0, 1, 1], [], []>} : vector<8x8xf32>, vector<8x512xf32>, vector<8x512xf32> -> vector<8x512xf32>
    %265 = arith.addf %261, %264 : vector<8x512xf32>
    %266 = vector.extract_strided_slice %216 {offsets = [0, 1], sizes = [8, 511], strides = [1, 1]} : vector<8x512xf32> to vector<8x511xf32>
    %267 = vector.extract_strided_slice %216 {offsets = [0, 0], sizes = [8, 1], strides = [1, 1]} : vector<8x512xf32> to vector<8x1xf32>
    %268 = tpu.concatenate %266, %267 in 1 : vector<8x511xf32>, vector<8x1xf32> -> vector<8x512xf32>
    %cst_95 = arith.constant 0.000000e+00 : f32
    %269 = vector.shape_cast %14 : vector<1x512xi1> to vector<1x512xi1>
    %270 = vector.broadcast %269 : vector<1x512xi1> to vector<8x512xi1>
    %271 = vector.broadcast %cst_95 : f32 to vector<8x512xf32>
    %272 = arith.select %270, %268, %271 : vector<8x512xi1>, vector<8x512xf32>
    %c5_96 = arith.constant 5 : index
    %c0_97 = arith.constant 0 : index
    %c0_98 = arith.constant 0 : index
    %273 = vector.load %arg6[%c5_96, %c0_97, %c0_98] : memref<9x8x8xf32, #tpu.memory_space<vmem>>, vector<1x8x8xf32>
    %274 = vector.shape_cast %273 : vector<1x8x8xf32> to vector<8x8xf32>
    %cst_99 = arith.constant dense<0.000000e+00> : vector<8x512xf32>
    %275 = tpu.matmul %274, %272, %cst_99 {dimension_numbers = #tpu.dot_dimension_numbers<[1], [0], [0], [1], [0, 0, 1, 1], [], []>} : vector<8x8xf32>, vector<8x512xf32>, vector<8x512xf32> -> vector<8x512xf32>
    %276 = arith.addf %265, %275 : vector<8x512xf32>
    %277 = vector.extract_strided_slice %216 {offsets = [0, 15], sizes = [8, 497], strides = [1, 1]} : vector<8x512xf32> to vector<8x497xf32>
    %278 = vector.extract_strided_slice %216 {offsets = [0, 0], sizes = [8, 15], strides = [1, 1]} : vector<8x512xf32> to vector<8x15xf32>
    %279 = tpu.concatenate %277, %278 in 1 : vector<8x497xf32>, vector<8x15xf32> -> vector<8x512xf32>
    %280 = arith.andi %18, %12 : vector<1x512xi1>
    %cst_100 = arith.constant 0.000000e+00 : f32
    %281 = vector.shape_cast %280 : vector<1x512xi1> to vector<1x512xi1>
    %282 = vector.broadcast %281 : vector<1x512xi1> to vector<8x512xi1>
    %283 = vector.broadcast %cst_100 : f32 to vector<8x512xf32>
    %284 = arith.select %282, %279, %283 : vector<8x512xi1>, vector<8x512xf32>
    %c6_101 = arith.constant 6 : index
    %c0_102 = arith.constant 0 : index
    %c0_103 = arith.constant 0 : index
    %285 = vector.load %arg6[%c6_101, %c0_102, %c0_103] : memref<9x8x8xf32, #tpu.memory_space<vmem>>, vector<1x8x8xf32>
    %286 = vector.shape_cast %285 : vector<1x8x8xf32> to vector<8x8xf32>
    %cst_104 = arith.constant dense<0.000000e+00> : vector<8x512xf32>
    %287 = tpu.matmul %286, %284, %cst_104 {dimension_numbers = #tpu.dot_dimension_numbers<[1], [0], [0], [1], [0, 0, 1, 1], [], []>} : vector<8x8xf32>, vector<8x512xf32>, vector<8x512xf32> -> vector<8x512xf32>
    %288 = arith.addf %276, %287 : vector<8x512xf32>
    %289 = vector.extract_strided_slice %216 {offsets = [0, 16], sizes = [8, 496], strides = [1, 1]} : vector<8x512xf32> to vector<8x496xf32>
    %290 = vector.extract_strided_slice %216 {offsets = [0, 0], sizes = [8, 16], strides = [1, 1]} : vector<8x512xf32> to vector<8x16xf32>
    %291 = tpu.concatenate %289, %290 in 1 : vector<8x496xf32>, vector<8x16xf32> -> vector<8x512xf32>
    %cst_105 = arith.constant 0.000000e+00 : f32
    %292 = vector.shape_cast %18 : vector<1x512xi1> to vector<1x512xi1>
    %293 = vector.broadcast %292 : vector<1x512xi1> to vector<8x512xi1>
    %294 = vector.broadcast %cst_105 : f32 to vector<8x512xf32>
    %295 = arith.select %293, %291, %294 : vector<8x512xi1>, vector<8x512xf32>
    %c7_106 = arith.constant 7 : index
    %c0_107 = arith.constant 0 : index
    %c0_108 = arith.constant 0 : index
    %296 = vector.load %arg6[%c7_106, %c0_107, %c0_108] : memref<9x8x8xf32, #tpu.memory_space<vmem>>, vector<1x8x8xf32>
    %297 = vector.shape_cast %296 : vector<1x8x8xf32> to vector<8x8xf32>
    %cst_109 = arith.constant dense<0.000000e+00> : vector<8x512xf32>
    %298 = tpu.matmul %297, %295, %cst_109 {dimension_numbers = #tpu.dot_dimension_numbers<[1], [0], [0], [1], [0, 0, 1, 1], [], []>} : vector<8x8xf32>, vector<8x512xf32>, vector<8x512xf32> -> vector<8x512xf32>
    %299 = arith.addf %288, %298 : vector<8x512xf32>
    %300 = vector.extract_strided_slice %216 {offsets = [0, 17], sizes = [8, 495], strides = [1, 1]} : vector<8x512xf32> to vector<8x495xf32>
    %301 = vector.extract_strided_slice %216 {offsets = [0, 0], sizes = [8, 17], strides = [1, 1]} : vector<8x512xf32> to vector<8x17xf32>
    %302 = tpu.concatenate %300, %301 in 1 : vector<8x495xf32>, vector<8x17xf32> -> vector<8x512xf32>
    %303 = arith.andi %18, %14 : vector<1x512xi1>
    %cst_110 = arith.constant 0.000000e+00 : f32
    %304 = vector.shape_cast %303 : vector<1x512xi1> to vector<1x512xi1>
    %305 = vector.broadcast %304 : vector<1x512xi1> to vector<8x512xi1>
    %306 = vector.broadcast %cst_110 : f32 to vector<8x512xf32>
    %307 = arith.select %305, %302, %306 : vector<8x512xi1>, vector<8x512xf32>
    %c8_111 = arith.constant 8 : index
    %c0_112 = arith.constant 0 : index
    %c0_113 = arith.constant 0 : index
    %308 = vector.load %arg6[%c8_111, %c0_112, %c0_113] : memref<9x8x8xf32, #tpu.memory_space<vmem>>, vector<1x8x8xf32>
    %309 = vector.shape_cast %308 : vector<1x8x8xf32> to vector<8x8xf32>
    %cst_114 = arith.constant dense<0.000000e+00> : vector<8x512xf32>
    %310 = tpu.matmul %309, %307, %cst_114 {dimension_numbers = #tpu.dot_dimension_numbers<[1], [0], [0], [1], [0, 0, 1, 1], [], []>} : vector<8x8xf32>, vector<8x512xf32>, vector<8x512xf32> -> vector<8x512xf32>
    %311 = arith.addf %299, %310 : vector<8x512xf32>
    %c0_115 = arith.constant 0 : index
    %c2_116 = arith.constant 2 : index
    %312 = vector.load %arg8[%c0_115, %c2_116] : memref<8x4xf32, #tpu.memory_space<vmem>>, vector<8x1xf32>
    %313 = vector.broadcast %312 : vector<8x1xf32> to vector<8x512xf32>
    %314 = arith.mulf %311, %313 : vector<8x512xf32>
    %c1_117 = arith.constant 1 : index
    %c0_118 = arith.constant 0 : index
    %315 = vector.load %arg10[%c1_117, %c0_118] : memref<2x512xf32, #tpu.memory_space<vmem>>, vector<1x512xf32>
    %316 = vector.broadcast %98 : f32 to vector<1x512xf32>
    %317 = arith.mulf %316, %315 : vector<1x512xf32>
    %318 = vector.broadcast %317 : vector<1x512xf32> to vector<8x512xf32>
    %319 = arith.addf %314, %318 : vector<8x512xf32>
    %c0_119 = arith.constant 0 : index
    %c3_120 = arith.constant 3 : index
    %320 = vector.load %arg8[%c0_119, %c3_120] : memref<8x4xf32, #tpu.memory_space<vmem>>, vector<8x1xf32>
    %321 = vector.broadcast %320 : vector<8x1xf32> to vector<8x512xf32>
    %322 = arith.addf %319, %321 : vector<8x512xf32>
    %cst_121 = arith.constant 2.000000e-01 : f32
    %323 = vector.broadcast %cst_121 : f32 to vector<8x512xf32>
    %324 = arith.mulf %323, %322 : vector<8x512xf32>
    %325 = arith.maximumf %322, %324 : vector<8x512xf32>
    %326 = vector.extract_strided_slice %5 {offsets = [48, 0], sizes = [8, 2], strides = [1, 1]} : vector<56x2xf32> to vector<8x2xf32>
    %327 = vector.extract_strided_slice %326 {offsets = [0, 0], sizes = [8, 1], strides = [1, 1]} : vector<8x2xf32> to vector<8x1xf32>
    %328 = vector.shape_cast %327 : vector<8x1xf32> to vector<8x1xf32>
    %329 = vector.broadcast %328 : vector<8x1xf32> to vector<8x256xf32>
    %330 = vector.extract_strided_slice %326 {offsets = [0, 1], sizes = [8, 1], strides = [1, 1]} : vector<8x2xf32> to vector<8x1xf32>
    %331 = vector.shape_cast %330 : vector<8x1xf32> to vector<8x1xf32>
    %332 = vector.broadcast %331 : vector<8x1xf32> to vector<8x256xf32>
    %333 = tpu.concatenate %329, %332 in 1 : vector<8x256xf32>, vector<8x256xf32> -> vector<8x512xf32>
    %334 = arith.mulf %325, %333 : vector<8x512xf32>
    %c0_122 = arith.constant 0 : index
    %c0_123 = arith.constant 0 : index
    %335 = vector.load %arg7[%c0_122, %c0_123] : memref<12x8xf32, #tpu.memory_space<vmem>>, vector<12x8xf32>
    %cst_124 = arith.constant dense<0.000000e+00> : vector<12x512xf32>
    %336 = tpu.matmul %335, %334, %cst_124 {dimension_numbers = #tpu.dot_dimension_numbers<[1], [0], [0], [1], [0, 0, 1, 1], [], []>} : vector<12x8xf32>, vector<8x512xf32>, vector<12x512xf32> -> vector<12x512xf32>
    %c0_125 = arith.constant 0 : index
    %c0_126 = arith.constant 0 : index
    %337 = vector.load %arg9[%c0_125, %c0_126] : memref<12x1xf32, #tpu.memory_space<vmem>>, vector<12x1xf32>
    %338 = vector.broadcast %337 : vector<12x1xf32> to vector<12x512xf32>
    %339 = arith.addf %336, %338 : vector<12x512xf32>
    %340 = vector.extract_strided_slice %325 {offsets = [0, 0], sizes = [8, 256], strides = [1, 1]} : vector<8x512xf32> to vector<8x256xf32>
    %c0_127 = arith.constant 0 : index
    %c0_128 = arith.constant 0 : index
    %c0_129 = arith.constant 0 : index
    %341 = vector.load %arg11[%c0_127, %c0_128, %c0_129] : memref<2x8x256xf32, #tpu.memory_space<vmem>>, vector<1x8x256xf32>
    %342 = vector.shape_cast %341 : vector<1x8x256xf32> to vector<8x256xf32>
    %343 = vector.shape_cast %340 : vector<8x256xf32> to vector<1x8x256xf32>
    tpu.vector_store %arg11[%c0_127, %c0_128, %c0_129], %343 {strides = array<i32>} : memref<2x8x256xf32, #tpu.memory_space<vmem>>, vector<1x8x256xf32>,
    %344 = vector.extract_strided_slice %339 {offsets = [0, 0], sizes = [12, 256], strides = [1, 1]} : vector<12x512xf32> to vector<12x256xf32>
    %c0_130 = arith.constant 0 : index
    %c0_131 = arith.constant 0 : index
    %c0_132 = arith.constant 0 : index
    %345 = vector.load %arg12[%c0_130, %c0_131, %c0_132] : memref<2x12x256xf32, #tpu.memory_space<vmem>>, vector<1x12x256xf32>
    %346 = vector.shape_cast %345 : vector<1x12x256xf32> to vector<12x256xf32>
    %347 = vector.shape_cast %344 : vector<12x256xf32> to vector<1x12x256xf32>
    tpu.vector_store %arg12[%c0_130, %c0_131, %c0_132], %347 {strides = array<i32>} : memref<2x12x256xf32, #tpu.memory_space<vmem>>, vector<1x12x256xf32>,
    %348 = vector.extract_strided_slice %325 {offsets = [0, 256], sizes = [8, 256], strides = [1, 1]} : vector<8x512xf32> to vector<8x256xf32>
    %c1_133 = arith.constant 1 : index
    %c0_134 = arith.constant 0 : index
    %c0_135 = arith.constant 0 : index
    %349 = vector.load %arg11[%c1_133, %c0_134, %c0_135] : memref<2x8x256xf32, #tpu.memory_space<vmem>>, vector<1x8x256xf32>
    %350 = vector.shape_cast %349 : vector<1x8x256xf32> to vector<8x256xf32>
    %351 = vector.shape_cast %348 : vector<8x256xf32> to vector<1x8x256xf32>
    tpu.vector_store %arg11[%c1_133, %c0_134, %c0_135], %351 {strides = array<i32>} : memref<2x8x256xf32, #tpu.memory_space<vmem>>, vector<1x8x256xf32>,
    %352 = vector.extract_strided_slice %339 {offsets = [0, 256], sizes = [12, 256], strides = [1, 1]} : vector<12x512xf32> to vector<12x256xf32>
    %c1_136 = arith.constant 1 : index
    %c0_137 = arith.constant 0 : index
    %c0_138 = arith.constant 0 : index
    %353 = vector.load %arg12[%c1_136, %c0_137, %c0_138] : memref<2x12x256xf32, #tpu.memory_space<vmem>>, vector<1x12x256xf32>
    %354 = vector.shape_cast %353 : vector<1x12x256xf32> to vector<12x256xf32>
    %355 = vector.shape_cast %352 : vector<12x256xf32> to vector<1x12x256xf32>
    tpu.vector_store %arg12[%c1_136, %c0_137, %c0_138], %355 {strides = array<i32>} : memref<2x12x256xf32, #tpu.memory_space<vmem>>, vector<1x12x256xf32>,
    return
  }
}

</mosaic_0001>

<bundles_post_ra>
// kernel: mobile_synthesis_block_forward.1
= control target key start
LH: loop header
LB: loop body
LE: loop exit
PB: predicated region body
PF: predicated region fallthrough
CT: control target
= control target key end

     0   :  { %18 = vsyncpa [#allocation3], 0  ;;  %s2997_s24 = smov [#allocation2]   ;;  %s3940_s0 = inlined_call_operand.vmem [shape: f32[2], index: 0, kind: input, shape index: {}]   ;;  %s3941_s1 = inlined_call_operand.vmem [shape: f32[16,2], index: 1, kind: input, shape index: {}]   ;;  %s3942_s2 = inlined_call_operand.vmem [shape: f32[56,16], index: 2, kind: input, shape index: {}]   ;;  %s3943_s3 = inlined_call_operand.vmem [shape: f32[56,1], index: 3, kind: input, shape index: {}]   ;;  %s3944_s4 = inlined_call_operand.vmem [shape: f32[4,4,512], index: 4, kind: input, shape index: {}]   ;;  %s3945_s5 = inlined_call_operand.vmem [shape: f32[9,8,4], index: 5, kind: input, shape index: {}]   ;;  %s3946_s6 = inlined_call_operand.vmem [shape: f32[9,8,8], index: 6, kind: input, shape index: {}]   ;;  %s3947_s7 = inlined_call_operand.vmem [shape: f32[12,8], index: 7, kind: input, shape index: {}]   ;;  %s3948_s8 = inlined_call_operand.vmem [shape: f32[8,4], index: 8, kind: input, shape index: {}]   ;;  %s3949_s9 = inlined_call_operand.vmem [shape: f32[12,1], index: 9, kind: input, shape index: {}]   ;;  %s3950_s10 = inlined_call_operand.vmem [shape: f32[2,512], index: 10, kind: input, shape index: {}]   ;;  %s3951_s11 = inlined_call_operand.vmem [shape: f32[2,8,256], index: 11, kind: output, shape index: {0}]   ;;  %s3952_s12 = inlined_call_operand.vmem [shape: f32[2,12,256], index: 12, kind: output, shape index: {1}]  }
   0x1   :  { %s24_s23 = sshll.u32 %s3940_s0, 4  ;;  %s25_s23 = int_to_ptr.vmem [resolvable:$true] %s24_s23 }
   0x2   :  { %27 = dma.vmem_to_smem %s25_s23, 16, %s2997_s24, [#allocation3]  }
   0x3   :  { %2995 = dma.done.wait [#allocation3], 16  }
   0x4   :  { %2996 = vsyncadd [#allocation3], 4294967280 }
   0x5   :  { %52 = sfence }
   0x6   :  { %v61_v0 = vld [vmem:[%s3941_s1 + $0x8] sm:$0xff]  ;;  %v60_v1 = vld [vmem:[%s3941_s1] sm:$0xff]  ;;  %vm3961_vm0 = vcmask 130048   ;;  %v2998_v3 = vmov 0   ;;  %v64_v5 = vld [vmem:[%s3943_s3 + $0x10] sm:$0xff]  ;;  %v2999_v22 = vmov 1   ;;  %v164_v42 = vlaneseq }
   0x7   :  { %140 = vmatpush.msra.mxu0 %v61_v0  ;;  %v53_v2 = vld [vmem:[%s3942_s2] sm:$0xff]  ;;  %2967 = vset.pattern.permute.xlu1 %v2998_v3  ;;  %v63_v4 = vld [vmem:[%s3943_s3 + $0x8] sm:$0xff]  ;;  %v65_v7 = vld [vmem:[%s3943_s3 + $0x18] sm:$0xff]  ;;  %vm228_vm1 = vcmask 1043456   ;;  %v3000_v59 = vmov -1.0   ;;  %s3002_s25 = smov 17  }
   0x8   :  { %76 = vperm.xlu1 %2967, %v63_v4   ;;  %2966 = vset.pattern.permute.xlu0 %v2998_v3  ;;  %v62_v6 = vld [vmem:[%s3943_s3] sm:$0xff]  ;;  %v54_v8 = vld [vmem:[%s3942_s2 + $0x8] sm:$0xff]  ;;  %v55_v10 = vld [vmem:[%s3942_s2 + $0x10] sm:$0xff]  ;;  %v3144_v47 = vand.u32 127, %v164_v42  ;;  %s3003_s26 = smov 15   ;;  %s3004_s27 = smov 1  }
   0x9   :  { %141 = vmatpush.msra.mxu0 %v60_v1  ;;  %81 = vperm.xlu0 %2966, %v64_v5   ;;  %v66_v9 = vld [vmem:[%s3943_s3 + $0x20] sm:$0xff]  ;;  %v56_v11 = vld [vmem:[%s3942_s2 + $0x18] sm:$0xff]  ;;  %v2781_v35 = vld [vmem:[%s3944_s4 + $0x28] sm:$0xff]  ;;  %s3005_s28 = smov 127   ;;  %s3006_s0 = smov 113   ;;  %vm3962_vm11 = vcmask 31744  }
   0xa   :  { %2771 = vmatmul.msk.f32.vlgmr.msra.gmra.mxu0 %vm3961_vm0, %v53_v2  ;;  %2968 = vset.pattern.permute.xlu2 %v2998_v3  ;;  %v57_v12 = vld [vmem:[%s3942_s2 + $0x20] sm:$0xff]  ;;  %v2783_v40 = vld [vmem:[%s3944_s4 + $0x38] sm:$0xff]  ;;  %v3147_v48 = vadd.s32 384, %v3144_v47  ;;  %v3151_v50 = vadd.s32 256, %v3144_v47  ;;  %v3154_v51 = vadd.s32 128, %v3144_v47  ;;  %v2782_v53 = vld [vmem:[%s3944_s4 + $0x30] sm:$0xff] }
   0xb   :  { %v2780_v30 = vld [vmem:[%s3944_s4 + $0x20] sm:$0xff]  ;;  %v193_v2 = vand.u32 1, %v3144_v47  ;;  %s3007_s13 = smov 112   ;;  %s3008_s14 = smov 111   ;;  %vm3955_vm14 = vcmask 138240  }
   0xc   :  { %v196_v49 = vand.u32 1, %v3147_v48  ;;  %v195_v58 = vand.u32 1, %v3151_v50  ;;  %v194_v61 = vand.u32 1, %v3154_v51 }
   0xd   :  { %vm197_vm5 = vcmp.eq.s32.totalorder %v193_v2, 0 }
   0xe   :  { %vm200_vm2 = vcmp.eq.s32.totalorder %v196_v49, 0  ;;  %vm199_vm3 = vcmp.eq.s32.totalorder %v195_v58, 0  ;;  %vm198_vm4 = vcmp.eq.s32.totalorder %v194_v61, 0 }
   0xf   :  { %v204_v60 = vsel %vm200_vm2, 1.0, %v3000_v59 }
  0x10   :  { %71 = vperm.xlu1 %2967, %v62_v6  }
  0x11   :  { %86 = vperm.xlu0 %2966, %v65_v7   ;;  %v2779_v7 = vld [vmem:[%s3944_s4 + $0x18] sm:$0xff] }
  0x12   :  { %2772 = vmatmul.msk.f32.gmra.mxu0 %vm3961_vm0, %v54_v8 }
  0x19   :  { %91 = vperm.xlu0 %2966, %v66_v9  }
  0x1a   :  { %2773 = vmatmul.msk.f32.gmra.mxu0 %vm3961_vm0, %v55_v10  ;;  %v203_v10 = vsel %vm199_vm3, 1.0, %v3000_v59 }
  0x22   :  { %2774 = vmatmul.msk.f32.gmra.mxu0 %vm3961_vm0, %v56_v11  ;;  %v202_v11 = vsel %vm198_vm4, 1.0, %v3000_v59 }
  0x2a   :  { %2775 = vmatmul.msk.f32.gmra.mxu0 %vm3961_vm0, %v57_v12 }
  0x7a   :  { %v77_v14 = vpop.permute.xlu1 %76 }
  0x7b   :  { %v82_v17 = vpop.permute.xlu0 %81 }
  0x82   :  { %v72_v18 = vpop.permute.xlu1 %71 }
  0x83   :  { %v87_v23 = vpop.permute.xlu0 %86 }
  0x87   :  { %v143_v13 = vpop.f32.mrf.mxu0 }
  0x88   :  { %v144_v21 = vadd.f32 %v143_v13, %v72_v18 }
  0x8b   :  { %v92_v27 = vpop.permute.xlu0 %91 }
  0x8f   :  { %v146_v15 = vpop.f32.mrf.mxu0 }
  0x90   :  { %v147_v16 = vadd.f32 %v146_v15, %v77_v14 }
  0x92   :  { %240 = vperm.xlu0 %2966, %v147_v16  }
  0x97   :  { %v149_v19 = vpop.f32.mrf.mxu0 }
  0x98   :  { %v150_v20 = vadd.f32 %v149_v19, %v82_v17  ;;  %v2778_v17 = vld [vmem:[%s3944_s4 + $0x10] sm:$0xff] }
  0x9a   :  { %258 = vperm.xlu2 %2968, %v150_v20   ;;  %2972 = vset.pattern.permute.xlu0 %v2999_v22 }
  0x9b   :  { %224 = vperm.xlu0 %2972, %v144_v21  }
  0x9f   :  { %v152_v24 = vpop.f32.mrf.mxu0 }
  0xa0   :  { %v153_v25 = vadd.f32 %v152_v24, %v87_v23  ;;  %v208_v23 = vand.u32 16, %v3147_v48  ;;  %v201_v24 = vsel %vm197_vm5, 1.0, %v3000_v59 }
  0xa2   :  { %276 = vperm.xlu1 %2967, %v153_v25   ;;  %2969 = vset.pattern.permute.xlu2 %v2999_v22  ;;  %vm212_vm6 = vcmp.eq.s32.totalorder %v208_v23, 0 }
  0xa3   :  { %261 = vperm.xlu2 %2969, %v150_v20   ;;  %2975 = vset.pattern.permute.xlu0 %v2998_v3 }
  0xa7   :  { %v155_v26 = vpop.f32.mrf.mxu0 }
  0xa8   :  { %v156_v28 = vadd.f32 %v155_v26, %v92_v27  ;;  %v207_v26 = vand.u32 16, %v3151_v50 }
  0xaa   :  { %2970 = vset.pattern.permute.xlu1 %v2999_v22  ;;  %vm211_vm7 = vcmp.eq.s32.totalorder %v207_v26, 0  ;;  %v67_v26 = vld [vmem:[%s3943_s3 + $0x28] sm:$0xff] }
  0xab   :  { %279 = vperm.xlu2 %2969, %v153_v25   ;;  %243 = vperm.xlu1 %2970, %v147_v16  }
  0xb3   :  { %2971 = vset.pattern.permute.xlu2 %v2998_v3  ;;  %2973 = vset.pattern.permute.xlu1 %v2998_v3 }
  0xb4   :  { %378 = vperm.xlu1 %2973, %v156_v28   ;;  %221 = vperm.xlu2 %2971, %v144_v21  }
  0xbc   :  { %2974 = vset.pattern.permute.xlu2 %v2999_v22 }
  0xbd   :  { %382 = vperm.xlu2 %2974, %v156_v28  }
  0xf4   :  { %v259_v29 = vpop.permute.xlu2 %258 }
  0xf5   :  { %v263_v31 = vrot.slane %v259_v29, 4 }
  0xf7   :  { %v265_v32 = vsel %vm228_vm1, %v259_v29, %v263_v31  ;;  %v205_v31 = vand.u32 16, %v3144_v47 }
  0xf8   :  { %v269_v33 = vmul.f32 %v2780_v30, %v265_v32 }
  0xf9   :  { %vm209_vm8 = vcmp.eq.s32.totalorder %v205_v31, 0  ;;  %v175_v31 = vand.u32 255, %v3151_v50 }
  0xfa   :  { %291 = vst [vmem:[#allocation1] ss:$2 sm:$0xff] %v269_v33 }
  0xfb   :  { %vm3290_vm10 = vcmp.ge.s32.totalorder %v175_v31, 16 }
  0xfd   :  { %v262_v34 = vpop.permute.xlu2 %261 }
  0xfe   :  { %v264_v36 = vrot.slane %v262_v34, 4 }
 0x100   :  { %v266_v37 = vsel %vm228_vm1, %v262_v34, %v264_v36 }
 0x101   :  { %v270_v38 = vmul.f32 %v2781_v35, %v266_v37  ;;  %v3163_v63 = vld.sshfl [vmem:[#allocation1] sm:$0xff pattern:$0x75316420]  ;;  %v295_v0 = vld.sshfl [vmem:[#allocation1 + $0x8] sm:$0xff pattern:$0x75316420] }
 0x102   :  { %v206_v35 = vand.u32 16, %v3154_v51  ;;  %v218_v37 = vld [vmem:[%s3944_s4 + $0x8] sm:$0xff] }
 0x103   :  { %293 = vst [vmem:[#allocation1 + $0x10] ss:$2 sm:$0xff] %v270_v38 }
 0x104   :  { %v241_v57 = vpop.permute.xlu0 %240  ;;  %vm210_vm9 = vcmp.eq.s32.totalorder %v206_v35, 0 }
 0x105   :  { %v280_v39 = vpop.permute.xlu2 %279  ;;  %v245_v6 = vrot.slane %v241_v57, 4 }
 0x106   :  { %v282_v41 = vrot.slane %v280_v39, 4 }
 0x107   :  { %v247_v18 = vsel %vm228_vm1, %v241_v57, %v245_v6  ;;  %v214_v57 = vsel %vm210_vm9, 1.0, %v3000_v59 }
 0x108   :  { %v284_v43 = vsel %vm228_vm1, %v280_v39, %v282_v41  ;;  %v251_v29 = vmul.f32 %v2778_v17, %v247_v18  ;;  %v215_v41 = vsel %vm211_vm7, 1.0, %v3000_v59 }
 0x109   :  { %v288_v44 = vmul.f32 %v2783_v40, %v284_v43  ;;  %v216_v40 = vsel %vm212_vm6, 1.0, %v3000_v59  ;;  %v303_v43 = vmul.f32 %v295_v0, %v202_v11 }
 0x10a   :  { %v3142_v45 = vld.sshfl [vmem:[#allocation1 + $0x10] sm:$0xff pattern:$0x75316420]  ;;  %v297_v46 = vld.sshfl [vmem:[#allocation1 + $0x18] sm:$0xff pattern:$0x75316420] }
 0x10b   :  { %322 = vst [vmem:[#allocation1 + $0x10] ss:$2 sm:$0xff] %v288_v44  ;;  %v305_v34 = vmul.f32 %v297_v46, %v204_v60 }
 0x10d   :  { %v225_v19 = vpop.permute.xlu0 %224  ;;  %v311_v42 = vrot.slane %v305_v34, 4 }
 0x10e   :  { %v227_v30 = vrot.slane %v225_v19, 4  ;;  %v222_v32 = vpop.permute.xlu2 %221 }
 0x10f   :  { %v226_v39 = vrot.slane %v222_v32, 4 }
 0x110   :  { %v230_v38 = vsel %vm228_vm1, %v225_v19, %v227_v30 }
 0x111   :  { %v234_v44 = vmul.f32 %v230_v38, %v218_v37  ;;  %v173_v37 = vand.u32 255, %v3144_v47  ;;  %v169_v38 = vand.u32 15, %v3144_v47  ;;  %v172_v47 = vand.u32 15, %v3147_v48 }
 0x112   :  { %v326_v56 = vld.sshfl [vmem:[#allocation1 + $0x18] sm:$0xff pattern:$0x75316420]  ;;  %v325_v4 = vld.sshfl [vmem:[#allocation1 + $0x10] sm:$0xff pattern:$0x75316420] }
 0x113   :  { %v334_v1 = vmul.f32 %v326_v56, %v204_v60  ;;  %v333_v12 = vmul.f32 %v325_v4, %v203_v10  ;;  %v213_v56 = vsel %vm209_vm8, 1.0, %v3000_v59  ;;  %v310_v60 = vrot.slane %v303_v43, 4 }
 0x114   :  { %v277_v52 = vpop.permute.xlu1 %276  ;;  %v302_v4 = vmul.f32 %v3163_v63, %v201_v24  ;;  %vm3306_vm12 = vcmp.ge.s32.totalorder %v173_v37, 16  ;;  %vm3310_vm13 = vcmp.ne.s32.totalorder %v169_v38, 0  ;;  %v3981_v43 = vmov 0  ;;  %v2811_v37 = vld [vmem:[%s3945_s5 + $0x18] sm:$0xff] }
 0x115   :  { %v281_v54 = vrot.slane %v277_v52, 4  ;;  %v340_v8 = vrot.slane %v334_v1, 4  ;;  %v3982_v43 = vsel %vm3310_vm13, 4294967295, %v3981_v43  ;;  %vm3953_vm15 = vmand %vm3306_vm12, %vm3310_vm13  ;;  %vm3321_vm2 = vcmp.ne.s32.totalorder %v172_v47, 0 }
 0x116   :  { %vm3375_vm6 = vcmp.ne.s32.totalorder %v169_v38, 15  ;;  %vm3960_vm8 = vcmask 121856  }
 0x117   :  { %v283_v55 = vsel %vm228_vm1, %v277_v52, %v281_v54  ;;  %v342_v21 = vsel %vm228_vm1, %v333_v12, %v340_v8  ;;  %v304_v52 = vmul.f32 %v3142_v45, %v203_v10  ;;  %v229_v54 = vsel %vm228_vm1, %v222_v32, %v226_v39  ;;  %vm3956_vm9 = vmand %vm3306_vm12, %vm3375_vm6 }
 0x118   :  { %v287_v62 = vmul.f32 %v2782_v53, %v283_v55  ;;  %v217_v53 = vld [vmem:[%s3944_s4] sm:$0xff]  ;;  %v312_v8 = vsel %vm228_vm1, %v302_v4, %v310_v60  ;;  %s3001_s4 = smov 16   ;;  %v170_v60 = vand.u32 15, %v3154_v51 }
 0x119   :  { %v313_v58 = vsel %vm228_vm1, %v304_v52, %v311_v42  ;;  %v233_v1 = vmul.f32 %v229_v54, %v217_v53 }
 0x11a   :  { %320 = vst [vmem:[#allocation1] ss:$2 sm:$0xff] %v287_v62  ;;  %v317_v0 = vadd.f32 %v313_v58, %v234_v44  ;;  %vm3358_vm5 = vcmp.ne.s32.totalorder %v170_v60, 0 }
 0x11b   :  { %v316_v59 = vadd.f32 %v312_v8, %v233_v1  ;;  %v3987_v1 = vmov 0 }
 0x11c   :  { %v3988_v1 = vsel %vm3358_vm5, 4294967295, %v3987_v1 }
 0x11d   :  { %v244_v5 = vpop.permute.xlu1 %243 }
 0x11e   :  { %v246_v9 = vrot.slane %v244_v5, 4 }
 0x120   :  { %v248_v13 = vsel %vm228_vm1, %v244_v5, %v246_v9 }
 0x121   :  { %v323_v14 = vld.sshfl [vmem:[#allocation1] sm:$0xff pattern:$0x75316420]  ;;  %v324_v15 = vld.sshfl [vmem:[#allocation1 + $0x8] sm:$0xff pattern:$0x75316420]  ;;  %v252_v16 = vmul.f32 %v2779_v7, %v248_v13  ;;  %v383_v13 = vpop.permute.xlu2 %382 }
 0x122   :  { %v332_v20 = vmul.f32 %v324_v15, %v202_v11  ;;  %v331_v27 = vmul.f32 %v323_v14, %v201_v24  ;;  %v386_v14 = vmul.f32 0.5, %v383_v13 }
 0x123   :  { %v346_v25 = vadd.f32 %v342_v21, %v252_v16 }
 0x124   :  { %v339_v28 = vrot.slane %v332_v20, 4 }
 0x125   :  { %351 = vst [vmem:[#allocation1 + $0x10] ss:$2 sm:$0xff] %v346_v25  ;;  %v58_v25 = vld [vmem:[%s3942_s2 + $0x28] sm:$0xff] }
 0x126   :  { %v341_v33 = vsel %vm228_vm1, %v331_v27, %v339_v28  ;;  %v379_v15 = vpop.permute.xlu1 %378  ;;  %2776 = vmatmul.msk.f32.gmra.mxu0 %vm3961_vm0, %v58_v25  ;;  %v3283_v27 = vld [vmem:[%s3948_s8] sm:$0xff]  ;;  %v2802_v25 = vld [vmem:[%s3945_s5 + $0x10] sm:$0xff] }
 0x127   :  { %v345_v36 = vadd.f32 %v341_v33, %v251_v29  ;;  %v385_v63 = vmul.f32 0.5, %v379_v15 }
 0x129   :  { %349 = vst [vmem:[#allocation1] ss:$2 sm:$0xff] %v345_v36  ;;  %v2785_v36 = vld [vmem:[%s3945_s5 + $0x8] sm:$0xff] }
 0x12c   :  { %v354_v46 = vld.sshfl [vmem:[#allocation1 + $0x10] sm:$0xff pattern:$0x75316420]  ;;  %v355_v49 = vld.sshfl [vmem:[#allocation1 + $0x18] sm:$0xff pattern:$0x75316420] }
 0x12d   :  { %v363_v55 = vmul.f32 %v355_v49, %v216_v40  ;;  %v362_v61 = vmul.f32 %v354_v46, %v215_v41  ;;  %v171_v49 = vand.u32 15, %v3151_v50 }
 0x12f   :  { %v369_v62 = vrot.slane %v363_v55, 4  ;;  %vm3348_vm3 = vcmp.ne.s32.totalorder %v171_v49, 0  ;;  %vm3381_vm7 = vcmp.ne.s32.totalorder %v171_v49, 15 }
 0x130   :  { %v352_v2 = vld.sshfl [vmem:[#allocation1] sm:$0xff pattern:$0x75316420]  ;;  %v353_v45 = vld.sshfl [vmem:[#allocation1 + $0x8] sm:$0xff pattern:$0x75316420]  ;;  %vm3954_vm4 = vmand %vm3290_vm10, %vm3348_vm3 }
 0x131   :  { %v371_v5 = vsel %vm228_vm1, %v362_v61, %v369_v62  ;;  %v361_v6 = vmul.f32 %v353_v45, %v214_v57  ;;  %v360_v9 = vmul.f32 %v352_v2, %v213_v56  ;;  %v444_v57 = vld [vmem:[%s3945_s5] sm:$0xff] }
 0x132   :  { %v375_v7 = vadd.f32 %v371_v5, %v317_v0  ;;  %v3985_v0 = vmov 0 }
 0x133   :  { %v368_v10 = vrot.slane %v361_v6, 4  ;;  %v3986_v0 = vsel %vm3348_vm3, 4294967295, %v3985_v0 }
 0x134   :  { %391 = vst [vmem:[#allocation1 + $0x10] ss:$2 sm:$0xff] %v375_v7 }
 0x135   :  { %v370_v11 = vsel %vm228_vm1, %v360_v9, %v368_v10 }
 0x136   :  { %v374_v12 = vadd.f32 %v370_v11, %v316_v59 }
 0x138   :  { %389 = vst [vmem:[#allocation1] ss:$2 sm:$0xff] %v374_v12 }
 0x13b   :  { %v394_v16 = vld.sshfl [vmem:[#allocation1 + $0x10] sm:$0xff pattern:$0x75316420]  ;;  %v395_v23 = vld.sshfl [vmem:[#allocation1 + $0x18] sm:$0xff pattern:$0x75316420] }
 0x13c   :  { %v3201_v17 = vmul.f32 %v394_v16, %v386_v14  ;;  %v3213_v24 = vmul.f32 %v395_v23, %v386_v14 }
 0x13e   :  { %452 = vrot.lane.b32.xlu2 %v3201_v17, %s3001_s4 }
 0x13f   :  { %v392_v18 = vld.sshfl [vmem:[#allocation1] sm:$0xff pattern:$0x75316420]  ;;  %v393_v19 = vld.sshfl [vmem:[#allocation1 + $0x8] sm:$0xff pattern:$0x75316420] }
 0x140   :  { %v3205_v20 = vmul.f32 %v392_v18, %v385_v63  ;;  %v3207_v21 = vmul.f32 %v393_v19, %v385_v63 }
 0x142   :  { %450 = vrot.lane.b32.xlu1 %v3207_v21, %s3001_s4  ;;  %448 = vrot.lane.b32.xlu0 %v3205_v20, %s3001_s4 }
 0x146   :  { %407 = vrot.lane.b32.xlu2 %v3213_v24, %s3002_s25 }
 0x14a   :  { %413 = vrot.lane.b32.xlu0 %v3205_v20, %s3002_s25  ;;  %445 = vrot.lane.b32.xlu1 %v3213_v24, %s3001_s4 }
 0x14e   :  { %417 = vrot.lane.b32.xlu2 %v3201_v17, %s3002_s25 }
 0x152   :  { %667 = vrot.lane.b32.xlu0 %v3213_v24, %s3003_s26  ;;  %415 = vrot.lane.b32.xlu1 %v3207_v21, %s3002_s25 }
 0x156   :  { %672 = vrot.lane.b32.xlu2 %v3207_v21, %s3003_s26 }
 0x15a   :  { %670 = vrot.lane.b32.xlu1 %v3205_v20, %s3003_s26  ;;  %674 = vrot.lane.b32.xlu0 %v3201_v17, %s3003_s26 }
 0x15e   :  { %807 = vrot.lane.b32.xlu2 %v3207_v21, %s3004_s27 }
 0x162   :  { %805 = vrot.lane.b32.xlu1 %v3205_v20, %s3004_s27  ;;  %809 = vrot.lane.b32.xlu0 %v3201_v17, %s3004_s27 }
 0x166   :  { %1030 = vrot.lane.b32.xlu2 %v3205_v20, %s3005_s28 }
 0x16a   :  { %802 = vrot.lane.b32.xlu1 %v3213_v24, %s3004_s27  ;;  %1032 = vrot.lane.b32.xlu0 %v3207_v21, %s3005_s28 }
 0x16e   :  { %1036 = vrot.lane.b32.xlu2 %v3213_v24, %s3005_s28 }
 0x172   :  { %1034 = vrot.lane.b32.xlu1 %v3201_v17, %s3005_s28  ;;  %1161 = vrot.lane.b32.xlu0 %v3205_v20, %s3006_s0 }
 0x176   :  { %1167 = vrot.lane.b32.xlu2 %v3213_v24, %s3006_s0 }
 0x17a   :  { %1165 = vrot.lane.b32.xlu1 %v3201_v17, %s3006_s0  ;;  %1163 = vrot.lane.b32.xlu0 %v3207_v21, %s3006_s0 }
 0x17e   :  { %1302 = vrot.lane.b32.xlu2 %v3213_v24, %s3007_s13 }
 0x182   :  { %1296 = vrot.lane.b32.xlu1 %v3205_v20, %s3007_s13  ;;  %1300 = vrot.lane.b32.xlu0 %v3201_v17, %s3007_s13 }
 0x186   :  { %1427 = vrot.lane.b32.xlu2 %v3205_v20, %s3008_s14 }
 0x18a   :  { %1298 = vrot.lane.b32.xlu1 %v3207_v21, %s3007_s13  ;;  %1431 = vrot.lane.b32.xlu0 %v3201_v17, %s3008_s14 }
 0x18e   :  { %1429 = vrot.lane.b32.xlu2 %v3207_v21, %s3008_s14 }
 0x192   :  { %1433 = vrot.lane.b32.xlu1 %v3213_v24, %s3008_s14  ;;  %96 = vperm.xlu0 %2975, %v67_v26  }
 0x196   :  { %1589 = vperm.xlu2 %2974, %v3283_v27  }
 0x198   :  { %v453_v28 = vpop.permute.xlu2 %452 }
 0x19a   :  { %1565 = vperm.xlu1 %2973, %v3283_v27  }
 0x1a0   :  { %v408_v29 = vpop.permute.xlu2 %407 }
 0x1a8   :  { %v418_v30 = vpop.permute.xlu2 %417 }
 0x1a9   :  { %v422_v53 = vsel %vm3955_vm14, %v418_v30, %v408_v29 }
 0x1aa   :  { %v443_v61 = vsel %vm3321_vm2, %v422_v53, 0.0 }
 0x1b0   :  { %v3288_v32 = vpop.permute.xlu2 %672 }
 0x1b4   :  { %v451_v34 = vpop.permute.xlu1 %450  ;;  %v449_v35 = vpop.permute.xlu0 %448 }
 0x1b5   :  { %v454_v39 = vsel %vm3961_vm0, %v449_v35, %v451_v34  ;;  %v455_v40 = vsel %vm3961_vm0, %v451_v34, %v453_v28 }
 0x1b6   :  { %2788 = vmatpush.msk.msra.mxu2 %vm228_vm1, %v454_v39  ;;  %v472_v41 = vsel %vm3290_vm10, %v455_v40, 0.0 }
 0x1b7   :  { %2790 = vmatpush.msk.msra.mxu3 %vm228_vm1, %v472_v41  ;;  %2789 = vmatmul.msk.f32.vlgmr.msra.gmra.mxu2 %vm3962_vm11, %v2785_v36 }
 0x1b8   :  { %2791 = vmatmul.msk.f32.vlgmr.msra.gmra.mxu3 %vm3962_vm11, %v2785_v36  ;;  %v3326_v54 = vpop.permute.xlu2 %807 }
 0x1bc   :  { %v414_v44 = vpop.permute.xlu0 %413  ;;  %v446_v46 = vpop.permute.xlu1 %445 }
 0x1bd   :  { %v427_v55 = vsel %vm3955_vm14, %v408_v29, %v414_v44  ;;  %v461_v56 = vsel %vm3961_vm0, %v446_v46, %v449_v35  ;;  %v456_v62 = vsel %vm3961_vm0, %v453_v28, %v446_v46  ;;  %v59_v28 = vld [vmem:[%s3942_s2 + $0x30] sm:$0xff]  ;;  %v2820_v46 = vld [vmem:[%s3945_s5 + $0x20] sm:$0xff] }
 0x1be   :  { %v470_v58 = vsel %vm3306_vm12, %v461_v56, 0.0  ;;  %v440_v50 = vsel %vm3953_vm15, %v427_v55, 0.0  ;;  %vm3390_vm15 = vcmp.ne.s32.totalorder %v170_v60, 15  ;;  %2777 = vmatmul.msk.f32.gmra.mxu0 %vm3961_vm0, %v59_v28 }
 0x1bf   :  { %2786 = vmatpush.msk.msra.mxu1 %vm228_vm1, %v470_v58  ;;  %2794 = vmatpush.msk.msrb.mxu2 %vm228_vm1, %v440_v50 }
 0x1c0   :  { %2787 = vmatmul.msk.f32.vlgmr.msra.gmra.mxu1 %vm3962_vm11, %v2785_v36  ;;  %2795 = vmatmul.msk.f32.vlgmr.msrb.gmra.mxu2 %vm3962_vm11, %v444_v57  ;;  %v3371_v8 = vpop.permute.xlu2 %1030 }
 0x1c1   :  { %2792 = vmatpush.msk.msrb.mxu1 %vm228_vm1, %v456_v62  ;;  %2800 = vmatpush.msk.msra.mxu2 %vm228_vm1, %v443_v61 }
 0x1c4   :  { %v668_v2 = vpop.permute.xlu0 %667  ;;  %v416_v45 = vpop.permute.xlu1 %415 }
 0x1c5   :  { %v420_v4 = vsel %vm3955_vm14, %v414_v44, %v416_v45  ;;  %v421_v5 = vsel %vm3955_vm14, %v416_v45, %v418_v30  ;;  %vm3404_vm14 = vcmp.ne.s32.totalorder %v172_v47, 15 }
 0x1c6   :  { %v442_v6 = vsel %vm3954_vm4, %v421_v5, 0.0  ;;  %v441_v7 = vsel %vm3358_vm5, %v420_v4, 0.0  ;;  %vm3957_vm4 = vmand %vm3290_vm10, %vm3381_vm7 }
 0x1c7   :  { %2796 = vmatpush.msk.msrb.mxu3 %vm228_vm1, %v441_v7  ;;  %2798 = vmatpush.msk.msra.mxu1 %vm228_vm1, %v442_v6  ;;  %v2838_v6 = vld [vmem:[%s3945_s5 + $0x30] sm:$0xff] }
 0x1c8   :  { %2793 = vmatmul.msk.f32.vlgmr.msrb.gmra.mxu1 %vm3962_vm11, %v2785_v36  ;;  %2797 = vmatmul.msk.f32.vlgmr.msrb.gmra.mxu3 %vm3962_vm11, %v444_v57  ;;  %v1037_v29 = vpop.permute.xlu2 %1036 }
 0x1c9   :  { %2801 = vmatmul.msk.f32.vlgmr.msra.gmra.mxu2 %vm3962_vm11, %v444_v57 }
 0x1cc   :  { %v671_v11 = vpop.permute.xlu1 %670  ;;  %v675_v12 = vpop.permute.xlu0 %674 }
 0x1cd   :  { %v677_v13 = vsel %vm3960_vm8, %v671_v11, %v3288_v32  ;;  %v684_v14 = vsel %vm3960_vm8, %v668_v2, %v671_v11  ;;  %v678_v15 = vsel %vm3960_vm8, %v3288_v32, %v675_v12  ;;  %v679_v16 = vsel %vm3960_vm8, %v675_v12, %v668_v2 }
 0x1ce   :  { %v697_v18 = vsel %vm3956_vm9, %v684_v14, 0.0  ;;  %v698_v19 = vsel %vm3390_vm15, %v677_v13, 0.0  ;;  %v699_v23 = vsel %vm3957_vm4, %v678_v15, 0.0  ;;  %v700_v26 = vsel %vm3404_vm14, %v679_v16, 0.0  ;;  %v2829_v13 = vld [vmem:[%s3945_s5 + $0x28] sm:$0xff] }
 0x1cf   :  { %2803 = vmatpush.msk.msra.mxu3 %vm228_vm1, %v697_v18  ;;  %2805 = vmatpush.msk.msrb.mxu1 %vm228_vm1, %v698_v19  ;;  %vm3958_vm9 = vcmask 7168   ;;  %vm3959_vm4 = vcmask 1039360   ;;  %vm3963_vm8 = vcmask 924672  }
 0x1d0   :  { %2807 = vmatpush.msk.msrb.mxu2 %vm228_vm1, %v699_v23  ;;  %2799 = vmatmul.msk.f32.vlgmr.msra.gmra.mxu1 %vm3962_vm11, %v444_v57  ;;  %v1168_v38 = vpop.permute.xlu2 %1167  ;;  %v1047_v58 = vsel %vm3959_vm4, %v1037_v29, %v3371_v8 }
 0x1d1   :  { %2804 = vmatmul.msk.f32.vlgmr.msra.gmra.mxu3 %vm3962_vm11, %v2802_v25  ;;  %2808 = vmatmul.msk.f32.vlgmr.msrb.gmra.mxu2 %vm3962_vm11, %v2802_v25  ;;  %v1059_v61 = vsel %vm3404_vm14, %v1047_v58, 0.0 }
 0x1d2   :  { %2809 = vmatpush.msk.msrb.mxu3 %vm228_vm1, %v700_v26 }
 0x1d4   :  { %v806_v30 = vpop.permute.xlu1 %805  ;;  %v810_v31 = vpop.permute.xlu0 %809 }
 0x1d5   :  { %v812_v32 = vsel %vm3958_vm9, %v806_v30, %v3326_v54  ;;  %v813_v34 = vsel %vm3958_vm9, %v3326_v54, %v810_v31  ;;  %v174_v54 = vand.u32 255, %v3154_v51  ;;  %v3997_v51 = vmov 0 }
 0x1d6   :  { %v829_v35 = vsel %vm3358_vm5, %v812_v32, 0.0  ;;  %v830_v36 = vsel %vm3348_vm3, %v813_v34, 0.0 }
 0x1d7   :  { %2814 = vmatpush.msk.msra.mxu2 %vm228_vm1, %v829_v35  ;;  %2816 = vmatpush.msk.msra.mxu3 %vm228_vm1, %v830_v36 }
 0x1d8   :  { %2806 = vmatmul.msk.f32.vlgmr.msrb.gmra.mxu1 %vm3962_vm11, %v2802_v25  ;;  %v1303_v55 = vpop.permute.xlu2 %1302 }
 0x1d9   :  { %2821 = vmatpush.msk.msrb.mxu2 %vm228_vm1, %v3205_v20  ;;  %2810 = vmatmul.msk.f32.vlgmr.msrb.gmra.mxu3 %vm3962_vm11, %v2802_v25 }
 0x1da   :  { %2815 = vmatmul.msk.f32.vlgmr.msra.gmra.mxu2 %vm3962_vm11, %v2811_v37  ;;  %2823 = vmatpush.msk.msrb.mxu3 %vm228_vm1, %v3207_v21 }
 0x1db   :  { %2827 = vmatpush.msk.msra.mxu2 %vm228_vm1, %v3213_v24 }
 0x1dc   :  { %v803_v39 = vpop.permute.xlu1 %802  ;;  %v1033_v40 = vpop.permute.xlu0 %1032 }
 0x1dd   :  { %v814_v41 = vsel %vm3958_vm9, %v810_v31, %v803_v39  ;;  %v819_v47 = vsel %vm3958_vm9, %v803_v39, %v806_v30  ;;  %v1039_v20 = vsel %vm3959_vm4, %v3371_v8, %v1033_v40  ;;  %vm3491_vm9 = vcmp.lt.s32.totalorder %v174_v54, 240  ;;  %v2847_v31 = vld [vmem:[%s3945_s5 + $0x38] sm:$0xff]  ;;  %v158_v39 = vpop.f32.mrf.mxu0 }
 0x1de   :  { %v828_v44 = vsel %vm3310_vm13, %v819_v47, 0.0  ;;  %v831_v21 = vsel %vm3321_vm2, %v814_v41, 0.0  ;;  %v1056_v24 = vsel %vm3375_vm6, %v1039_v20, 0.0  ;;  %v3998_v51 = vsel %vm3491_vm9, 4294967295, %v3997_v51  ;;  %vm3964_vm0 = vmand %vm3491_vm9, %vm3358_vm5 }
 0x1df   :  { %2812 = vmatpush.msk.msra.mxu1 %vm228_vm1, %v828_v44 }
 0x1e0   :  { %2813 = vmatmul.msk.f32.vlgmr.msra.gmra.mxu1 %vm3962_vm11, %v2811_v37  ;;  %v1428_v14 = vpop.permute.xlu2 %1427 }
 0x1e1   :  { %2817 = vmatmul.msk.f32.vlgmr.msra.gmra.mxu3 %vm3962_vm11, %v2811_v37  ;;  %2818 = vmatpush.msk.msrb.mxu1 %vm228_vm1, %v831_v21  ;;  %v2856_v21 = vld [vmem:[%s3945_s5 + $0x40] sm:$0xff]  ;;  %s404_s5 = sld [smem:[#allocation2]] }
 0x1e2   :  { %2822 = vmatmul.msk.f32.vlgmr.msrb.gmra.mxu2 %vm3962_vm11, %v2820_v46  ;;  %2830 = vmatpush.msk.msra.mxu3 %vm228_vm1, %v1056_v24 }
 0x1e3   :  { %2825 = vmatpush.msk.msra.mxu1 %vm228_vm1, %v3201_v17  ;;  %v176_v17 = vand.u32 255, %v3147_v48 }
 0x1e4   :  { %v1035_v49 = vpop.permute.xlu1 %1034  ;;  %v1162_v53 = vpop.permute.xlu0 %1161 }
 0x1e5   :  { %v1040_v56 = vsel %vm3959_vm4, %v1033_v40, %v1035_v49  ;;  %v1041_v57 = vsel %vm3959_vm4, %v1035_v49, %v1037_v29  ;;  %vm3501_vm4 = vcmp.lt.s32.totalorder %v176_v17, 240  ;;  %v1178_v7 = vsel %vm3963_vm8, %v1168_v38, %v1162_v53 }
 0x1e6   :  { %v1057_v50 = vsel %vm3390_vm15, %v1040_v56, 0.0  ;;  %v1058_v60 = vsel %vm3381_vm7, %v1041_v57, 0.0 }
 0x1e7   :  { %2834 = vmatpush.msk.msrb.mxu2 %vm228_vm1, %v1058_v60 }
 0x1e8   :  { %2819 = vmatmul.msk.f32.vlgmr.msrb.gmra.mxu1 %vm3962_vm11, %v2811_v37  ;;  %v1430_v26 = vpop.permute.xlu2 %1429 }
 0x1e9   :  { %2824 = vmatmul.msk.f32.vlgmr.msrb.gmra.mxu3 %vm3962_vm11, %v2820_v46  ;;  %2832 = vmatpush.msk.msrb.mxu1 %vm228_vm1, %v1057_v50 }
 0x1ea   :  { %2828 = vmatmul.msk.f32.vlgmr.msra.gmra.mxu2 %vm3962_vm11, %v2820_v46  ;;  %2836 = vmatpush.msk.msrb.mxu3 %vm228_vm1, %v1059_v61 }
 0x1ec   :  { %v1166_v62 = vpop.permute.xlu1 %1165  ;;  %v1164_v2 = vpop.permute.xlu0 %1163 }
 0x1ed   :  { %v1172_v45 = vsel %vm3963_vm8, %v1166_v62, %v1168_v38  ;;  %v1170_v4 = vsel %vm3963_vm8, %v1162_v53, %v1164_v2  ;;  %v1171_v5 = vsel %vm3963_vm8, %v1164_v2, %v1166_v62  ;;  %vm4001_vm8 = vcmask 31744  }
 0x1ee   :  { %v1193_v8 = vsel %vm3348_vm3, %v1172_v45, 0.0  ;;  %v1192_v11 = vsel %vm3964_vm0, %v1171_v5, 0.0  ;;  %v1191_v12 = vsel %vm3310_vm13, %v1170_v4, 0.0  ;;  %vm4002_vm11 = vmmov %vm4001_vm8  ;;  %vm3971_vm3 = vcmask 916480  }
 0x1ef   :  { %2839 = vmatpush.msk.msrb.mxu0 %vm228_vm1, %v1191_v12  ;;  %2843 = vmatpush.msk.msra.mxu2 %vm228_vm1, %v1193_v8  ;;  %vm4003_vm0 = vmand %vm3501_vm4, %vm3321_vm2 }
 0x1f0   :  { %2826 = vmatmul.msk.f32.vlgmr.msra.gmra.mxu1 %vm4001_vm8, %v2820_v46  ;;  %2840 = vmatmul.msk.f32.vlgmr.msrb.gmra.mxu0 %vm4002_vm11, %v2838_v6  ;;  %v1194_v15 = vsel %vm4003_vm0, %v1178_v7, 0.0  ;;  %vm4004_vm5 = vmmov %vm4001_vm8  ;;  %vm3973_vm11 = vcmask 908288  }
 0x1f1   :  { %2831 = vmatmul.msk.f32.vlgmr.msra.gmra.mxu3 %vm4004_vm5, %v2829_v13  ;;  %2841 = vmatpush.msk.msra.mxu1 %vm228_vm1, %v1192_v11  ;;  %vm4005_vm13 = vmmov %vm4004_vm5  ;;  %v1436_v28 = vsel %vm3973_vm11, %v1428_v14, %v1430_v26 }
 0x1f2   :  { %2835 = vmatmul.msk.f32.vlgmr.msrb.gmra.mxu2 %vm4005_vm13, %v2829_v13  ;;  %2845 = vmatpush.msk.msra.mxu3 %vm228_vm1, %v1194_v15  ;;  %vm4006_vm0 = vmmov %vm4004_vm5  ;;  %v1457_v38 = vsel %vm3375_vm6, %v1436_v28, 0.0 }
 0x1f3   :  { %vm4007_vm5 = vmmov %vm4006_vm0 }
 0x1f4   :  { %v1297_v16 = vpop.permute.xlu1 %1296  ;;  %v1301_v18 = vpop.permute.xlu0 %1300  ;;  %vm4008_vm13 = vmmov %vm4006_vm0 }
 0x1f5   :  { %v1313_v19 = vsel %vm3971_vm3, %v1303_v55, %v1297_v16  ;;  %v1307_v23 = vsel %vm3971_vm3, %v1301_v18, %v1303_v55  ;;  %vm3972_vm8 = vmand %vm3491_vm9, %vm3390_vm15 }
 0x1f6   :  { %2852 = vmatpush.msk.msrb.mxu2 %vm228_vm1, %v1307_v23  ;;  %v1325_v25 = vsel %vm3501_vm4, %v1313_v19, 0.0 }
 0x1f8   :  { %2833 = vmatmul.msk.f32.vlgmr.msrb.gmra.mxu1 %vm4006_vm0, %v2829_v13 }
 0x1f9   :  { %2837 = vmatmul.msk.f32.vlgmr.msrb.gmra.mxu3 %vm4007_vm5, %v2829_v13  ;;  %vm4009_vm5 = vmmov %vm4006_vm0 }
 0x1fa   :  { %2844 = vmatmul.msk.f32.vlgmr.msra.gmra.mxu2 %vm4008_vm13, %v2838_v6  ;;  %2854 = vmatpush.msk.msrb.mxu3 %vm228_vm1, %v1325_v25  ;;  %vm4010_vm13 = vmmov %vm4006_vm0 }
 0x1fc   :  { %v1299_v29 = vpop.permute.xlu1 %1298  ;;  %v1432_v30 = vpop.permute.xlu0 %1431 }
 0x1fd   :  { %v1305_v32 = vsel %vm3971_vm3, %v1297_v16, %v1299_v29  ;;  %v1306_v34 = vsel %vm3971_vm3, %v1299_v29, %v1301_v18  ;;  %v1437_v35 = vsel %vm3973_vm11, %v1430_v26, %v1432_v30  ;;  %vm4011_vm3 = vmmov %vm4006_vm0 }
 0x1fe   :  { %v1323_v36 = vsel %vm3491_vm9, %v1306_v34, 0.0  ;;  %v1458_v37 = vsel %vm3972_vm8, %v1437_v35, 0.0  ;;  %2848 = vmatpush.msk.msra.mxu0 %vm228_vm1, %v1305_v32  ;;  %vm3976_vm8 = vmand %vm3501_vm4, %vm3404_vm14  ;;  %v1572_v32 = vld [vmem:[%s3950_s10] ss:$2 sm:$0xf]  ;;  %v1573_v34 = vstv %s404_s5 }
 0x1ff   :  { %2849 = vmatmul.msk.f32.vlgmr.msra.gmra.mxu0 %vm4006_vm0, %v2847_v31  ;;  %2850 = vmatpush.msk.msrb.mxu1 %vm228_vm1, %v1323_v36  ;;  %vm4016_vm9 = vmmov %vm4006_vm0 }
 0x200   :  { %2857 = vmatpush.msk.msrb.mxu0 %vm228_vm1, %v1457_v38  ;;  %2842 = vmatmul.msk.f32.vlgmr.msra.gmra.mxu1 %vm4009_vm5, %v2838_v6  ;;  %vm4013_vm5 = vmmov %vm4006_vm0 }
 0x201   :  { %2846 = vmatmul.msk.f32.vlgmr.msra.gmra.mxu3 %vm4010_vm13, %v2838_v6  ;;  %2859 = vmatpush.msk.msra.mxu1 %vm228_vm1, %v1458_v37  ;;  %vm4014_vm13 = vmmov %vm4006_vm0 }
 0x202   :  { %2853 = vmatmul.msk.f32.vlgmr.msrb.gmra.mxu2 %vm4011_vm3, %v2847_v31  ;;  %vm4012_vm3 = vmmov %vm4006_vm0 }
 0x204   :  { %v1434_v40 = vpop.permute.xlu1 %1433  ;;  %v97_v41 = vpop.permute.xlu0 %96 }
 0x205   :  { %v1438_v47 = vsel %vm3973_vm11, %v1432_v30, %v1434_v40  ;;  %v1444_v20 = vsel %vm3973_vm11, %v1434_v40, %v1428_v14  ;;  %v159_v44 = vadd.f32 %v158_v39, %v97_v41  ;;  %vm4015_vm11 = vmmov %vm4006_vm0  ;;  %v1574_v39 = vmul.f32 %v1573_v34, %v1572_v32 }
 0x206   :  { %v1459_v24 = vsel %vm3381_vm7, %v1438_v47, 0.0  ;;  %v1460_v46 = vsel %vm3976_vm8, %v1444_v20, 0.0 }
 0x207   :  { %1606 = vperm.xlu1 %2973, %v159_v44   ;;  %1610 = vperm.xlu2 %2974, %v159_v44  }
 0x208   :  { %2858 = vmatmul.msk.f32.vlgmr.msrb.gmra.mxu0 %vm4012_vm3, %v2856_v21  ;;  %2861 = vmatpush.msk.msra.mxu2 %vm228_vm1, %v1459_v24 }
 0x209   :  { %2863 = vmatpush.msk.msra.mxu3 %vm228_vm1, %v1460_v46  ;;  %2851 = vmatmul.msk.f32.vlgmr.msrb.gmra.mxu1 %vm4006_vm0, %v2847_v31  ;;  %vm1666_vm1 = vcmask 64512  }
 0x20a   :  { %2855 = vmatmul.msk.f32.vlgmr.msrb.gmra.mxu3 %vm4013_vm5, %v2847_v31  ;;  %2862 = vmatmul.msk.f32.vlgmr.msra.gmra.mxu2 %vm4014_vm13, %v2856_v21  ;;  %vm4021_vm5 = vcmask 138240   ;;  %vm4022_vm13 = vnez %v3986_v0  ;;  %v3010_v0 = vmov 2  }
 0x20b   :  { %2977 = vset.pattern.permute.xlu0 %v3010_v0 }
 0x20f   :  { %2976 = vset.pattern.permute.xlu2 %v2998_v3 }
 0x211   :  { %2860 = vmatmul.msk.f32.vlgmr.msra.gmra.mxu1 %vm4015_vm11, %v2856_v21 }
 0x212   :  { %2864 = vmatmul.msk.f32.vlgmr.msra.gmra.mxu3 %vm4016_vm9, %v2856_v21  ;;  %vm4017_vm9 = vcmask 130048  }
 0x213   :  { %vm4018_vm11 = vmmov %vm4017_vm9 }
 0x214   :  { %vm4019_vm3 = vmmov %vm4017_vm9 }
 0x215   :  { %vm4020_vm0 = vmmov %vm4019_vm3 }
 0x23a   :  { %v529_v49 = vpop.f32.mrf.mxu2 }
 0x23b   :  { %v549_v54 = vpop.f32.mrf.mxu3  ;;  %v3607_v7 = vpop.f32.mrf.mxu0 }
 0x23d   :  { %v509_v53 = vpop.f32.mrf.mxu1 }
 0x243   :  { %v604_v55 = vpop.f32.mrf.mxu2 }
 0x244   :  { %v605_v18 = vadd.f32 %v604_v55, %v509_v53  ;;  %v1576_v55 = vperm.slane %v1574_v39, 0 }
 0x245   :  { %v569_v56 = vpop.f32.mrf.mxu1 }
 0x24b   :  { %v624_v57 = vpop.f32.mrf.mxu3 }
 0x24c   :  { %v664_v58 = vpop.f32.mrf.mxu2  ;;  %v625_v36 = vadd.f32 %v624_v57, %v529_v49 }
 0x24d   :  { %v644_v50 = vpop.f32.mrf.mxu1 }
 0x24e   :  { %v645_v35 = vadd.f32 %v644_v50, %v549_v54 }
 0x254   :  { %v735_v60 = vpop.f32.mrf.mxu3  ;;  %v775_v17 = vpop.f32.mrf.mxu2 }
 0x255   :  { %v755_v61 = vpop.f32.mrf.mxu1  ;;  %v798_v19 = vadd.f32 %v735_v60, %v605_v18  ;;  %v800_v37 = vadd.f32 %v775_v17, %v645_v35 }
 0x256   :  { %v799_v40 = vadd.f32 %v755_v61, %v625_v36  ;;  %v1590_v61 = vpop.permute.xlu2 %1589 }
 0x25c   :  { %v795_v62 = vpop.f32.mrf.mxu3 }
 0x25d   :  { %v886_v2 = vpop.f32.mrf.mxu2  ;;  %v866_v45 = vpop.f32.mrf.mxu1 }
 0x25e   :  { %v929_v23 = vadd.f32 %v866_v45, %v798_v19  ;;  %v930_v44 = vadd.f32 %v886_v2, %v799_v40  ;;  %v1566_v45 = vpop.permute.xlu1 %1565 }
 0x264   :  { %v906_v4 = vpop.f32.mrf.mxu3 }
 0x265   :  { %v963_v5 = vpop.f32.mrf.mxu2  ;;  %v926_v6 = vpop.f32.mrf.mxu1  ;;  %v931_v41 = vadd.f32 %v906_v4, %v800_v37 }
 0x266   :  { %v1026_v25 = vadd.f32 %v963_v5, %v929_v23 }
 0x26c   :  { %v983_v8 = vpop.f32.mrf.mxu3 }
 0x26d   :  { %v1023_v11 = vpop.f32.mrf.mxu2  ;;  %v1003_v12 = vpop.f32.mrf.mxu1  ;;  %v1027_v5 = vadd.f32 %v983_v8, %v930_v44  ;;  %v1578_v8 = vperm.slane %v1574_v39, 2 }
 0x26e   :  { %v1229_v13 = vpop.f32.mrf.mxu0  ;;  %v1028_v46 = vadd.f32 %v1003_v12, %v931_v41 }
 0x274   :  { %v1094_v14 = vpop.f32.mrf.mxu3 }
 0x275   :  { %v1134_v15 = vpop.f32.mrf.mxu2  ;;  %v1114_v16 = vpop.f32.mrf.mxu1  ;;  %v1157_v31 = vadd.f32 %v1094_v14, %v1026_v25  ;;  %v665_v14 = vadd.f32 %v664_v58, %v569_v56  ;;  %v1577_v58 = vperm.slane %v1574_v39, 1 }
 0x276   :  { %v1159_v18 = vadd.f32 %v1134_v15, %v1028_v46  ;;  %v1158_v49 = vadd.f32 %v1114_v16, %v1027_v5 }
 0x277   :  { %v1292_v38 = vadd.f32 %v1229_v13, %v1157_v31  ;;  %v801_v57 = vadd.f32 %v795_v62, %v665_v14 }
 0x279   :  { %v932_v13 = vadd.f32 %v926_v6, %v801_v57 }
 0x27c   :  { %v1154_v26 = vpop.f32.mrf.mxu3  ;;  %v1360_v28 = vpop.f32.mrf.mxu0 }
 0x27d   :  { %v1269_v29 = vpop.f32.mrf.mxu2  ;;  %v1249_v30 = vpop.f32.mrf.mxu1  ;;  %v1423_v47 = vadd.f32 %v1360_v28, %v1292_v38  ;;  %v1029_v28 = vadd.f32 %v1023_v11, %v932_v13  ;;  %v2865_v13 = vld [vmem:[%s3946_s6 + $0x8] sm:$0xff] }
 0x27e   :  { %v1294_v50 = vadd.f32 %v1269_v29, %v1159_v18  ;;  %v1293_v4 = vadd.f32 %v1249_v30, %v1158_v49  ;;  %v1607_v29 = vpop.permute.xlu1 %1606  ;;  %v1611_v18 = vpop.permute.xlu2 %1610 }
 0x27f   :  { %v1160_v15 = vadd.f32 %v1154_v26, %v1029_v28 }
 0x284   :  { %v1289_v20 = vpop.f32.mrf.mxu3 }
 0x285   :  { %v1400_v21 = vpop.f32.mrf.mxu2  ;;  %v1495_v24 = vpop.f32.mrf.mxu0  ;;  %v1295_v36 = vadd.f32 %v1289_v20, %v1160_v15 }
 0x286   :  { %v1558_v53 = vadd.f32 %v1495_v24, %v1423_v47  ;;  %v1380_v60 = vpop.f32.mrf.mxu1  ;;  %v1425_v19 = vadd.f32 %v1400_v21, %v1294_v50  ;;  %v1579_v47 = vperm.slane %v1574_v39, 3 }
 0x287   :  { %v1424_v23 = vadd.f32 %v1380_v60, %v1293_v4 }
 0x288   :  { %v1568_v54 = vmul.f32 %v1566_v45, %v1558_v53 }
 0x28a   :  { %v1584_v17 = vadd.f32 %v1576_v55, %v1568_v54 }
 0x28c   :  { %v1592_v2 = vadd.f32 %v1590_v61, %v1584_v17 }
 0x28d   :  { %v1420_v25 = vpop.f32.mrf.mxu3  ;;  %v1535_v12 = vpop.f32.mrf.mxu2 }
 0x28e   :  { %v1596_v31 = vmul.f32 0.2, %v1592_v2  ;;  %v1560_v32 = vadd.f32 %v1535_v12, %v1425_v19  ;;  %v1515_v34 = vpop.f32.mrf.mxu1  ;;  %v1426_v38 = vadd.f32 %v1420_v25, %v1295_v36 }
 0x28f   :  { %v1559_v56 = vadd.f32 %v1515_v34, %v1424_v23 }
 0x290   :  { %v1600_v16 = vmax.f32 %v1592_v2, %v1596_v31  ;;  %v1570_v62 = vmul.f32 %v1566_v45, %v1560_v32  ;;  %v1642_v31 = vld [vmem:[%s3946_s6] sm:$0xff] }
 0x291   :  { %v1569_v35 = vmul.f32 %v1566_v45, %v1559_v56 }
 0x292   :  { %v3612_v30 = vmul.f32 %v1607_v29, %v1600_v16  ;;  %v1586_v6 = vadd.f32 %v1578_v8, %v1570_v62 }
 0x293   :  { %v1585_v37 = vadd.f32 %v1577_v58, %v1569_v35 }
 0x294   :  { %1646 = vrot.lane.b32.xlu0 %v3612_v30, %s3001_s4  ;;  %v1594_v44 = vadd.f32 %v1590_v61, %v1586_v6 }
 0x295   :  { %v1593_v11 = vadd.f32 %v1590_v61, %v1585_v37  ;;  %v1555_v40 = vpop.f32.mrf.mxu3 }
 0x296   :  { %v1561_v41 = vadd.f32 %v1555_v40, %v1426_v38  ;;  %v1598_v53 = vmul.f32 0.2, %v1594_v44  ;;  %v2880_v38 = vld [vmem:[%s3946_s6 + $0x10] sm:$0xff] }
 0x297   :  { %v1597_v21 = vmul.f32 0.2, %v1593_v11 }
 0x298   :  { %v1571_v26 = vmul.f32 %v1566_v45, %v1561_v41  ;;  %v1602_v5 = vmax.f32 %v1594_v44, %v1598_v53  ;;  %v68_v45 = vld [vmem:[%s3943_s3 + $0x30] sm:$0xff] }
 0x299   :  { %v1601_v24 = vmax.f32 %v1593_v11, %v1597_v21 }
 0x29a   :  { %v1587_v46 = vadd.f32 %v1579_v47, %v1571_v26  ;;  %v3624_v54 = vmul.f32 %v1611_v18, %v1602_v5  ;;  %v2889_v47 = vld [vmem:[%s3946_s6 + $0x18] sm:$0xff] }
 0x29b   :  { %v3616_v55 = vmul.f32 %v1607_v29, %v1601_v24  ;;  %v3009_v29 = vmov 3  }
 0x29c   :  { %v1595_v20 = vadd.f32 %v1590_v61, %v1587_v46  ;;  %2978 = vset.pattern.permute.xlu1 %v3009_v29 }
 0x29d   :  { %1838 = vrot.lane.b32.xlu2 %v3616_v55, %s3003_s26  ;;  %1648 = vrot.lane.b32.xlu1 %v3616_v55, %s3001_s4 }
 0x29e   :  { %v1599_v60 = vmul.f32 0.2, %v1595_v20 }
 0x2a0   :  { %v1603_v14 = vmax.f32 %v1595_v20, %v1599_v60  ;;  %v2898_v60 = vld [vmem:[%s3946_s6 + $0x20] sm:$0xff] }
 0x2a2   :  { %v3622_v39 = vmul.f32 %v1611_v18, %v1603_v14 }
 0x2a4   :  { %1643 = vrot.lane.b32.xlu0 %v3622_v39, %s3001_s4 }
 0x2a5   :  { %1626 = vrot.lane.b32.xlu1 %v3616_v55, %s3002_s25  ;;  %1650 = vrot.lane.b32.xlu2 %v3624_v54, %s3001_s4 }
 0x2ac   :  { %1618 = vrot.lane.b32.xlu0 %v3622_v39, %s3002_s25 }
 0x2ad   :  { %1624 = vrot.lane.b32.xlu1 %v3612_v30, %s3002_s25  ;;  %1628 = vrot.lane.b32.xlu2 %v3624_v54, %s3002_s25 }
 0x2b4   :  { %1840 = vrot.lane.b32.xlu0 %v3624_v54, %s3003_s26 }
 0x2b5   :  { %1833 = vrot.lane.b32.xlu1 %v3622_v39, %s3003_s26  ;;  %1836 = vrot.lane.b32.xlu2 %v3612_v30, %s3003_s26 }
 0x2bc   :  { %1948 = vrot.lane.b32.xlu0 %v3616_v55, %s3004_s27 }
 0x2bd   :  { %1950 = vrot.lane.b32.xlu1 %v3624_v54, %s3004_s27  ;;  %1943 = vrot.lane.b32.xlu2 %v3622_v39, %s3004_s27 }
 0x2c4   :  { %1946 = vrot.lane.b32.xlu0 %v3612_v30, %s3004_s27 }
 0x2c5   :  { %2142 = vrot.lane.b32.xlu1 %v3612_v30, %s3005_s28  ;;  %2146 = vrot.lane.b32.xlu2 %v3624_v54, %s3005_s28 }
 0x2cc   :  { %2148 = vrot.lane.b32.xlu0 %v3622_v39, %s3005_s28 }
 0x2cd   :  { %2252 = vrot.lane.b32.xlu1 %v3612_v30, %s3006_s0  ;;  %2256 = vrot.lane.b32.xlu2 %v3624_v54, %s3006_s0 }
 0x2d4   :  { %2258 = vrot.lane.b32.xlu0 %v3622_v39, %s3006_s0 }
 0x2d5   :  { %2144 = vrot.lane.b32.xlu1 %v3616_v55, %s3005_s28  ;;  %2362 = vrot.lane.b32.xlu2 %v3612_v30, %s3007_s13 }
 0x2dc   :  { %2366 = vrot.lane.b32.xlu0 %v3624_v54, %s3007_s13 }
 0x2dd   :  { %2368 = vrot.lane.b32.xlu1 %v3622_v39, %s3007_s13  ;;  %2254 = vrot.lane.b32.xlu2 %v3616_v55, %s3006_s0 }
 0x2e4   :  { %2472 = vrot.lane.b32.xlu0 %v3612_v30, %s3008_s14 }
 0x2e5   :  { %2476 = vrot.lane.b32.xlu1 %v3624_v54, %s3008_s14  ;;  %2478 = vrot.lane.b32.xlu2 %v3622_v39, %s3008_s14 }
 0x2ec   :  { %2364 = vrot.lane.b32.xlu0 %v3616_v55, %s3007_s13 }
 0x2ed   :  { %2474 = vrot.lane.b32.xlu1 %v3616_v55, %s3008_s14  ;;  %101 = vperm.xlu2 %2976, %v68_v45  }
 0x2f4   :  { %2583 = vperm.xlu0 %2977, %v3283_v27  }
 0x2f5   :  { %2979 = vset.pattern.permute.xlu2 %v2999_v22  ;;  %2608 = vperm.xlu1 %2978, %v3283_v27  }
 0x2f7   :  { %v1839_v49 = vpop.permute.xlu2 %1838 }
 0x2fc   :  { %2982 = vset.pattern.permute.xlu0 %v2998_v3 }
 0x2fd   :  { %2980 = vset.pattern.permute.xlu1 %v2998_v3 }
 0x2ff   :  { %v1651_v57 = vpop.permute.xlu2 %1650 }
 0x306   :  { %v1647_v17 = vpop.permute.xlu0 %1646 }
 0x307   :  { %v1629_v50 = vpop.permute.xlu2 %1628 }
 0x30f   :  { %v1649_v61 = vpop.permute.xlu1 %1648  ;;  %v1837_v4 = vpop.permute.xlu2 %1836 }
 0x310   :  { %v1652_v19 = vsel %vm4017_vm9, %v1647_v17, %v1649_v61  ;;  %v1653_v2 = vsel %vm4018_vm11, %v1649_v61, %v1651_v57  ;;  %vm4023_vm9 = vmand %vm3290_vm10, %vm4022_vm13 }
 0x311   :  { %1705 = vmatpush.msrb.mxu1 %v1652_v19  ;;  %2869 = vmatpush.msk.msrb.mxu2 %vm3290_vm10, %v1653_v2  ;;  %vm4024_vm11 = vmmov %vm4021_vm5 }
 0x312   :  { %2870 = vmatmul.msk.f32.vlgmr.msrb.gmra.mxu2 %vm1666_vm1, %v2865_v13  ;;  %2868 = vmatmul.msk.f32.vlgmr.msrb.gmra.mxu1 %vm1666_vm1, %v2865_v13 }
 0x316   :  { %v1644_v22 = vpop.permute.xlu0 %1643 }
 0x317   :  { %v1654_v23 = vsel %vm4019_vm3, %v1651_v57, %v1644_v22  ;;  %v1659_v25 = vsel %vm4020_vm0, %v1644_v22, %v1647_v17  ;;  %v1627_v12 = vpop.permute.xlu1 %1626  ;;  %v1944_v28 = vpop.permute.xlu2 %1943  ;;  %vm4025_vm3 = vmmov %vm4021_vm5  ;;  %v2921_v22 = vld [vmem:[%s3946_s6 + $0x38] sm:$0xff] }
 0x318   :  { %v1631_v32 = vsel %vm4021_vm5, %v1627_v12, %v1629_v50  ;;  %2866 = vmatpush.msk.msra.mxu0 %vm3306_vm12, %v1659_v25  ;;  %1745 = vmatpush.msrb.mxu3 %v1654_v23  ;;  %vm4026_vm0 = vmmov %vm4025_vm3  ;;  %vm4027_vm5 = vcmask 121856  }
 0x319   :  { %2876 = vmatpush.msk.msra.mxu2 %vm4023_vm9, %v1631_v32  ;;  %2871 = vmatmul.msk.f32.vlgmr.msrb.gmra.mxu3 %vm1666_vm1, %v2865_v13  ;;  %v1842_v62 = vsel %vm4027_vm5, %v1837_v4, %v1839_v49  ;;  %vm4028_vm9 = vnez %v3982_v43 }
 0x31a   :  { %2877 = vmatmul.msk.f32.vlgmr.msra.gmra.mxu2 %vm1666_vm1, %v1642_v31  ;;  %2867 = vmatmul.msk.f32.vlgmr.msra.gmra.mxu0 %vm1666_vm1, %v2865_v13  ;;  %vm4029_vm8 = vmand %vm3306_vm12, %vm4028_vm9  ;;  %v2912_v13 = vld [vmem:[%s3946_s6 + $0x30] sm:$0xff] }
 0x31e   :  { %v1619_v34 = vpop.permute.xlu0 %1618 }
 0x31f   :  { %v1632_v8 = vsel %vm4024_vm11, %v1629_v50, %v1619_v34  ;;  %v1625_v56 = vpop.permute.xlu1 %1624  ;;  %v3714_v58 = vpop.permute.xlu2 %2146  ;;  %vm4030_vm11 = vnez %v3988_v1 }
 0x320   :  { %v1630_v15 = vsel %vm4025_vm3, %v1625_v56, %v1627_v12  ;;  %v1637_v16 = vsel %vm4026_vm0, %v1619_v34, %v1625_v56  ;;  %2878 = vmatpush.msk.msra.mxu3 %vm3321_vm2, %v1632_v8  ;;  %vm4031_vm3 = vmmov %vm4027_vm5 }
 0x321   :  { %2872 = vmatpush.msk.msrb.mxu0 %vm4029_vm8, %v1637_v16  ;;  %2874 = vmatpush.msk.msra.mxu1 %vm4030_vm11, %v1630_v15  ;;  %vm4032_vm8 = vmmov %vm4031_vm3 }
 0x322   :  { %2879 = vmatmul.msk.f32.vlgmr.msra.gmra.mxu3 %vm1666_vm1, %v1642_v31  ;;  %2873 = vmatmul.msk.f32.vlgmr.msrb.gmra.mxu0 %vm1666_vm1, %v1642_v31  ;;  %vm4033_vm0 = vmmov %vm4031_vm3 }
 0x323   :  { %2883 = vmatpush.msk.msrb.mxu1 %vm3390_vm15, %v1842_v62  ;;  %vm4034_vm5 = vmand %vm3290_vm10, %vm3381_vm7  ;;  %vm4036_vm10 = vcmask 7168  }
 0x324   :  { %2875 = vmatmul.msk.f32.vlgmr.msra.gmra.mxu1 %vm1666_vm1, %v1642_v31 }
 0x326   :  { %v1841_v35 = vpop.permute.xlu0 %1840 }
 0x327   :  { %v1843_v36 = vsel %vm4031_vm3, %v1839_v49, %v1841_v35  ;;  %v1834_v6 = vpop.permute.xlu1 %1833  ;;  %v2257_v37 = vpop.permute.xlu2 %2256  ;;  %vm4035_vm3 = vmand %vm3306_vm12, %vm3375_vm6 }
 0x328   :  { %v1844_v11 = vsel %vm4032_vm8, %v1841_v35, %v1834_v6  ;;  %v1849_v40 = vsel %vm4033_vm0, %v1834_v6, %v1837_v4  ;;  %2885 = vmatpush.msk.msrb.mxu2 %vm4034_vm5, %v1843_v36  ;;  %vm4037_vm12 = vmmov %vm4036_vm10  ;;  %vm4040_vm5 = vcmask 1039360  }
 0x329   :  { %2881 = vmatpush.msk.msra.mxu0 %vm4035_vm3, %v1849_v40  ;;  %2887 = vmatpush.msk.msrb.mxu3 %vm3404_vm14, %v1844_v11  ;;  %vm4038_vm8 = vmmov %vm4036_vm10 }
 0x32a   :  { %2886 = vmatmul.msk.f32.vlgmr.msrb.gmra.mxu2 %vm1666_vm1, %v2880_v38  ;;  %2888 = vmatmul.msk.f32.vlgmr.msrb.gmra.mxu3 %vm1666_vm1, %v2880_v38  ;;  %vm4039_vm0 = vmmov %vm4038_vm8 }
 0x32b   :  { %2882 = vmatmul.msk.f32.vlgmr.msra.gmra.mxu0 %vm1666_vm1, %v2880_v38  ;;  %vm4041_vm3 = vmmov %vm4040_vm5 }
 0x32c   :  { %2884 = vmatmul.msk.f32.vlgmr.msrb.gmra.mxu1 %vm1666_vm1, %v2880_v38 }
 0x32e   :  { %v1949_v33 = vpop.permute.xlu0 %1948 }
 0x32f   :  { %v1951_v41 = vpop.permute.xlu1 %1950  ;;  %v3757_v42 = vpop.permute.xlu2 %2362 }
 0x330   :  { %v1953_v44 = vsel %vm4036_vm10, %v1949_v33, %v1951_v41  ;;  %v1954_v21 = vsel %vm4037_vm12, %v1951_v41, %v1944_v28  ;;  %vm4042_vm10 = vcmask 924672  }
 0x331   :  { %2894 = vmatpush.msk.msra.mxu2 %vm4022_vm13, %v1953_v44  ;;  %2896 = vmatpush.msk.msra.mxu3 %vm3321_vm2, %v1954_v21  ;;  %vm4043_vm12 = vmmov %vm4042_vm10 }
 0x332   :  { %2895 = vmatmul.msk.f32.vlgmr.msra.gmra.mxu2 %vm1666_vm1, %v2889_v47  ;;  %2897 = vmatmul.msk.f32.vlgmr.msra.gmra.mxu3 %vm1666_vm1, %v2889_v47 }
 0x333   :  { %2113 = vmatpush.msrb.mxu2 %v3624_v54  ;;  %2133 = vmatpush.msrb.mxu3 %v3622_v39 }
 0x336   :  { %v1947_v26 = vpop.permute.xlu0 %1946 }
 0x337   :  { %v1952_v24 = vsel %vm4038_vm8, %v1947_v26, %v1949_v33  ;;  %v1959_v46 = vsel %vm4039_vm0, %v1944_v28, %v1947_v26  ;;  %v2143_v53 = vpop.permute.xlu1 %2142  ;;  %v2255_v20 = vpop.permute.xlu2 %2254  ;;  %vm4044_vm8 = vmmov %vm4041_vm3  ;;  %v2928_v28 = vld [vmem:[%s3946_s6 + $0x40] sm:$0xff] }
 0x338   :  { %2890 = vmatpush.msk.msrb.mxu0 %vm4028_vm9, %v1959_v46  ;;  %2892 = vmatpush.msk.msra.mxu1 %vm4030_vm11, %v1952_v24  ;;  %vm4045_vm0 = vmmov %vm4041_vm3 }
 0x339   :  { %2891 = vmatmul.msk.f32.vlgmr.msrb.gmra.mxu0 %vm1666_vm1, %v2889_v47  ;;  %2893 = vmatmul.msk.f32.vlgmr.msra.gmra.mxu1 %vm1666_vm1, %v2889_v47 }
 0x33a   :  { %2073 = vmatpush.msra.mxu0 %v3612_v30  ;;  %2093 = vmatpush.msrb.mxu1 %v3616_v55  ;;  %v2903_v30 = vld [vmem:[%s3946_s6 + $0x28] sm:$0xff]  ;;  %s2784_s6 = sld [smem:[#allocation2 + $0x1]] }
 0x33b   :  { %2901 = vmatmul.msk.f32.vlgmr.msrb.gmra.mxu2 %vm1666_vm1, %v2898_v60  ;;  %2902 = vmatmul.msk.f32.vlgmr.msrb.gmra.mxu3 %vm1666_vm1, %v2898_v60 }
 0x33e   :  { %v2149_v5 = vpop.permute.xlu0 %2148 }
 0x33f   :  { %v2152_v14 = vsel %vm4040_vm5, %v3714_v58, %v2149_v5  ;;  %v2158_v18 = vsel %vm4041_vm3, %v2149_v5, %v2143_v53  ;;  %v2253_v39 = vpop.permute.xlu1 %2252  ;;  %v2479_v54 = vpop.permute.xlu2 %2478  ;;  %vm4046_vm5 = vmand %vm3501_vm4, %vm3321_vm2  ;;  %vm4049_vm2 = vnez %v3998_v51 }
 0x340   :  { %2908 = vmatpush.msk.msra.mxu2 %vm3381_vm7, %v2152_v14  ;;  %2910 = vmatpush.msk.msra.mxu3 %vm3404_vm14, %v2158_v18  ;;  %vm4047_vm3 = vmmov %vm4042_vm10 }
 0x341   :  { %2899 = vmatmul.msk.f32.vlgmr.msra.gmra.mxu0 %vm1666_vm1, %v2898_v60  ;;  %2900 = vmatmul.msk.f32.vlgmr.msrb.gmra.mxu1 %vm1666_vm1, %v2898_v60  ;;  %v2261_v19 = vsel %vm4047_vm3, %v2255_v20, %v2257_v37 }
 0x343   :  { %2909 = vmatmul.msk.f32.vlgmr.msra.gmra.mxu2 %vm1666_vm1, %v2903_v30  ;;  %2911 = vmatmul.msk.f32.vlgmr.msra.gmra.mxu3 %vm1666_vm1, %v2903_v30 }
 0x346   :  { %v2259_v55 = vpop.permute.xlu0 %2258 }
 0x347   :  { %v2262_v45 = vsel %vm4042_vm10, %v2257_v37, %v2259_v55  ;;  %v2268_v49 = vsel %vm4043_vm12, %v2259_v55, %v2253_v39  ;;  %v2145_v57 = vpop.permute.xlu1 %2144  ;;  %v102_v50 = vpop.permute.xlu2 %101  ;;  %vm4048_vm10 = vmmov %vm4047_vm3  ;;  %vm4053_vm12 = vcmask 908288  }
 0x348   :  { %v2150_v17 = vsel %vm4044_vm8, %v2143_v53, %v2145_v57  ;;  %v2151_v61 = vsel %vm4045_vm0, %v2145_v57, %v3714_v58  ;;  %2917 = vmatpush.msk.msrb.mxu2 %vm4022_vm13, %v2262_v45  ;;  %2919 = vmatpush.msk.msrb.mxu3 %vm4046_vm5, %v2268_v49  ;;  %v162_v4 = vadd.f32 %v3607_v7, %v102_v50  ;;  %vm4050_vm13 = vmand %vm4049_vm2, %vm4030_vm11  ;;  %v2937_v50 = vld [vmem:[%s3950_s10 + $0x1] ss:$2 sm:$0xf] }
 0x349   :  { %v2260_v2 = vsel %vm4048_vm10, %v2253_v39, %v2255_v20  ;;  %2904 = vmatpush.msk.msrb.mxu0 %vm3375_vm6, %v2150_v17  ;;  %2906 = vmatpush.msk.msra.mxu1 %vm3390_vm15, %v2151_v61  ;;  %vm4054_vm8 = vmmov %vm4053_vm12  ;;  %v2592_v17 = vstv %s2784_s6 }
 0x34a   :  { %2625 = vperm.xlu1 %2980, %v162_v4   ;;  %2629 = vperm.xlu2 %2979, %v162_v4   ;;  %vm4055_vm0 = vmand %vm3501_vm4, %vm3404_vm14  ;;  %v2593_v0 = vmul.f32 %v2937_v50, %v2592_v17 }
 0x34b   :  { %2913 = vmatpush.msk.msra.mxu0 %vm4028_vm9, %v2260_v2  ;;  %2915 = vmatpush.msk.msrb.mxu1 %vm4050_vm13, %v2261_v19  ;;  %vm4051_vm9 = vcmask 916480   ;;  %vm4058_vm14 = vmmov %vm4054_vm8 }
 0x34c   :  { %2918 = vmatmul.msk.f32.vlgmr.msrb.gmra.mxu2 %vm1666_vm1, %v2912_v13  ;;  %2920 = vmatmul.msk.f32.vlgmr.msrb.gmra.mxu3 %vm1666_vm1, %v2912_v13  ;;  %vm4052_vm11 = vmmov %vm4051_vm9 }
 0x34d   :  { %2905 = vmatmul.msk.f32.vlgmr.msrb.gmra.mxu0 %vm1666_vm1, %v2903_v30  ;;  %2907 = vmatmul.msk.f32.vlgmr.msra.gmra.mxu1 %vm1666_vm1, %v2903_v30  ;;  %vm4056_vm5 = vmmov %vm4051_vm9 }
 0x34e   :  { %v2367_v52 = vpop.permute.xlu0 %2366  ;;  %vm4057_vm3 = vmmov %vm4056_vm5 }
 0x34f   :  { %v2369_v43 = vpop.permute.xlu1 %2368 }
 0x350   :  { %v2372_v1 = vsel %vm4051_vm9, %v2367_v52, %v2369_v43  ;;  %v2378_v7 = vsel %vm4052_vm11, %v2369_v43, %v3757_v42 }
 0x351   :  { %2443 = vmatpush.msra.mxu2 %v2372_v1  ;;  %2926 = vmatpush.msk.msra.mxu3 %vm3501_vm4, %v2378_v7  ;;  %vm4059_vm4 = vmmov %vm4054_vm8 }
 0x352   :  { %2981 = vset.pattern.permute.xlu2 %v2998_v3 }
 0x354   :  { %2925 = vmatmul.msk.f32.vlgmr.msra.gmra.mxu2 %vm1666_vm1, %v2921_v22  ;;  %2927 = vmatmul.msk.f32.vlgmr.msra.gmra.mxu3 %vm1666_vm1, %v2921_v22 }
 0x355   :  { %2914 = vmatmul.msk.f32.vlgmr.msra.gmra.mxu0 %vm1666_vm1, %v2912_v13  ;;  %2916 = vmatmul.msk.f32.vlgmr.msrb.gmra.mxu1 %vm1666_vm1, %v2912_v13 }
 0x356   :  { %v2473_v27 = vpop.permute.xlu0 %2472 }
 0x357   :  { %v2488_v23 = vsel %vm4053_vm12, %v2479_v54, %v2473_v27  ;;  %v2477_v25 = vpop.permute.xlu1 %2476 }
 0x358   :  { %v2482_v12 = vsel %vm4054_vm8, %v2477_v25, %v2479_v54  ;;  %2935 = vmatpush.msk.msrb.mxu3 %vm4055_vm0, %v2488_v23 }
 0x359   :  { %2933 = vmatpush.msk.msrb.mxu2 %vm3381_vm7, %v2482_v12  ;;  %vm4060_vm7 = vmand %vm4049_vm2, %vm3390_vm15  ;;  %v2639_v12 = vld [vmem:[%s3949_s9 + $0x8] sm:$0xf] }
 0x35a   :  { %2647 = vperm.xlu0 %2982, %v2639_v12  }
 0x35c   :  { %2934 = vmatmul.msk.f32.vlgmr.msrb.gmra.mxu2 %vm1666_vm1, %v2928_v28  ;;  %2936 = vmatmul.msk.f32.vlgmr.msrb.gmra.mxu3 %vm1666_vm1, %v2928_v28 }
 0x35e   :  { %v2365_v3 = vpop.permute.xlu0 %2364 }
 0x35f   :  { %v2370_v31 = vsel %vm4056_vm5, %v3757_v42, %v2365_v3  ;;  %v2371_v48 = vsel %vm4057_vm3, %v2365_v3, %v2367_v52  ;;  %v2475_v63 = vpop.permute.xlu1 %2474 }
 0x360   :  { %v2480_v32 = vsel %vm4058_vm14, %v2473_v27, %v2475_v63  ;;  %v2481_v34 = vsel %vm4059_vm4, %v2475_v63, %v2477_v25  ;;  %2403 = vmatpush.msrb.mxu0 %v2370_v31  ;;  %2923 = vmatpush.msk.msra.mxu1 %vm4049_vm2, %v2371_v48 }
 0x361   :  { %2922 = vmatmul.msk.f32.vlgmr.msrb.gmra.mxu0 %vm1666_vm1, %v2921_v22  ;;  %2924 = vmatmul.msk.f32.vlgmr.msra.gmra.mxu1 %vm1666_vm1, %v2921_v22 }
 0x362   :  { %2929 = vmatpush.msk.msra.mxu0 %vm3375_vm6, %v2480_v32  ;;  %2931 = vmatpush.msk.msrb.mxu1 %vm4060_vm7, %v2481_v34 }
 0x366   :  { %v2584_v7 = vpop.permute.xlu0 %2583 }
 0x369   :  { %2930 = vmatmul.msk.f32.vlgmr.msra.gmra.mxu0 %vm1666_vm1, %v2928_v28  ;;  %2932 = vmatmul.msk.f32.vlgmr.msrb.gmra.mxu1 %vm1666_vm1, %v2928_v28  ;;  %v2638_v28 = vld [vmem:[%s3949_s9] sm:$0xff] }
 0x36a   :  { %2642 = vperm.xlu2 %2981, %v2638_v28  }
 0x38f   :  { %v1707_v58 = vpop.f32.mrf.mxu1 }
 0x395   :  { %v1727_v10 = vpop.f32.mrf.mxu2 }
 0x397   :  { %v1687_v56 = vpop.f32.mrf.mxu0 }
 0x39c   :  { %v1747_v8 = vpop.f32.mrf.mxu3 }
 0x39d   :  { %v1810_v15 = vpop.f32.mrf.mxu2 }
 0x39e   :  { %v1811_v46 = vadd.f32 %v1810_v15, %v1727_v10  ;;  %v2597_v10 = vperm.slane %v2593_v0, 2 }
 0x39f   :  { %v1770_v62 = vpop.f32.mrf.mxu0 }
 0x3a0   :  { %v1771_v55 = vadd.f32 %v1770_v62, %v1687_v56 }
 0x3a1   :  { %v1790_v29 = vpop.f32.mrf.mxu1 }
 0x3a2   :  { %v1791_v45 = vadd.f32 %v1790_v29, %v1707_v58 }
 0x3a5   :  { %v1830_v16 = vpop.f32.mrf.mxu3 }
 0x3a6   :  { %v1831_v53 = vadd.f32 %v1830_v16, %v1747_v8  ;;  %v2598_v8 = vperm.slane %v2593_v0, 3 }
 0x3a8   :  { %v1876_v36 = vpop.f32.mrf.mxu0 }
 0x3a9   :  { %v1896_v51 = vpop.f32.mrf.mxu1  ;;  %v1939_v13 = vadd.f32 %v1876_v36, %v1771_v55  ;;  %v2609_v36 = vpop.permute.xlu1 %2608 }
 0x3aa   :  { %v1940_v19 = vadd.f32 %v1896_v51, %v1791_v45 }
 0x3ad   :  { %v1916_v9 = vpop.f32.mrf.mxu2  ;;  %v1936_v35 = vpop.f32.mrf.mxu3 }
 0x3ae   :  { %v1941_v20 = vadd.f32 %v1916_v9, %v1811_v46  ;;  %v1942_v60 = vadd.f32 %v1936_v35, %v1831_v53  ;;  %v2630_v53 = vpop.permute.xlu2 %2629 }
 0x3b5   :  { %v2026_v6 = vpop.f32.mrf.mxu2  ;;  %v2046_v59 = vpop.f32.mrf.mxu3 }
 0x3b6   :  { %v1986_v37 = vpop.f32.mrf.mxu0  ;;  %v2006_v38 = vpop.f32.mrf.mxu1  ;;  %v2051_v18 = vadd.f32 %v2026_v6, %v1941_v20  ;;  %v2052_v39 = vadd.f32 %v2046_v59, %v1942_v60 }
 0x3b7   :  { %v2049_v43 = vadd.f32 %v1986_v37, %v1939_v13  ;;  %v2050_v1 = vadd.f32 %v2006_v38, %v1940_v19 }
 0x3be   :  { %v2115_v11 = vpop.f32.mrf.mxu2  ;;  %v2135_v40 = vpop.f32.mrf.mxu3 }
 0x3bf   :  { %v2075_v33 = vpop.f32.mrf.mxu0  ;;  %v2095_v41 = vpop.f32.mrf.mxu1  ;;  %v2140_v49 = vadd.f32 %v2115_v11, %v2051_v18  ;;  %v2141_v57 = vadd.f32 %v2135_v40, %v2052_v39  ;;  %v2636_v18 = vld [vmem:[%s3947_s7] sm:$0xff] }
 0x3c0   :  { %v2138_v3 = vadd.f32 %v2075_v33, %v2049_v43  ;;  %v2139_v31 = vadd.f32 %v2095_v41, %v2050_v1  ;;  %v2595_v33 = vperm.slane %v2593_v0, 0 }
 0x3c6   :  { %v2225_v42 = vpop.f32.mrf.mxu2  ;;  %v2245_v47 = vpop.f32.mrf.mxu3 }
 0x3c7   :  { %v2250_v61 = vadd.f32 %v2225_v42, %v2140_v49  ;;  %v2251_v4 = vadd.f32 %v2245_v47, %v2141_v57  ;;  %v2596_v42 = vperm.slane %v2593_v0, 1  ;;  %v2626_v57 = vpop.permute.xlu1 %2625 }
 0x3ca   :  { %v2185_v44 = vpop.f32.mrf.mxu0  ;;  %v2205_v21 = vpop.f32.mrf.mxu1 }
 0x3cb   :  { %v2248_v56 = vadd.f32 %v2185_v44, %v2138_v3  ;;  %v2249_v58 = vadd.f32 %v2205_v21, %v2139_v31 }
 0x3cf   :  { %v2335_v26 = vpop.f32.mrf.mxu2  ;;  %v2355_v24 = vpop.f32.mrf.mxu3 }
 0x3d0   :  { %v2360_v2 = vadd.f32 %v2335_v26, %v2250_v61  ;;  %v2361_v52 = vadd.f32 %v2355_v24, %v2251_v4  ;;  %v2637_v61 = vld [vmem:[%s3947_s7 + $0x8] sm:$0xf]  ;;  %v2643_v4 = vpop.permute.xlu2 %2642 }
 0x3d2   :  { %v2295_v5 = vpop.f32.mrf.mxu0  ;;  %v2315_v14 = vpop.f32.mrf.mxu1 }
 0x3d3   :  { %v2358_v62 = vadd.f32 %v2295_v5, %v2248_v56  ;;  %v2359_v29 = vadd.f32 %v2315_v14, %v2249_v58 }
 0x3d7   :  { %v2445_v54 = vpop.f32.mrf.mxu2  ;;  %v2465_v30 = vpop.f32.mrf.mxu3 }
 0x3d8   :  { %v2470_v22 = vadd.f32 %v2445_v54, %v2360_v2  ;;  %v2471_v27 = vadd.f32 %v2465_v30, %v2361_v52 }
 0x3de   :  { %v2405_v23 = vpop.f32.mrf.mxu0  ;;  %v2425_v25 = vpop.f32.mrf.mxu1 }
 0x3df   :  { %v2555_v48 = vpop.f32.mrf.mxu2  ;;  %v2575_v63 = vpop.f32.mrf.mxu3  ;;  %v2468_v51 = vadd.f32 %v2405_v23, %v2358_v62  ;;  %v2469_v6 = vadd.f32 %v2425_v25, %v2359_v29 }
 0x3e0   :  { %v2580_v32 = vadd.f32 %v2555_v48, %v2470_v22  ;;  %v2581_v34 = vadd.f32 %v2575_v63, %v2471_v27  ;;  %v2648_v22 = vpop.permute.xlu0 %2647 }
 0x3e2   :  { %v2588_v15 = vmul.f32 %v2584_v7, %v2580_v32  ;;  %v2589_v16 = vmul.f32 %v2584_v7, %v2581_v34 }
 0x3e4   :  { %v2605_v9 = vadd.f32 %v2597_v10, %v2588_v15  ;;  %v2606_v35 = vadd.f32 %v2598_v8, %v2589_v16 }
 0x3e6   :  { %v2613_v59 = vadd.f32 %v2609_v36, %v2605_v9  ;;  %v2614_v37 = vadd.f32 %v2609_v36, %v2606_v35  ;;  %v2515_v38 = vpop.f32.mrf.mxu0  ;;  %v2535_v11 = vpop.f32.mrf.mxu1 }
 0x3e7   :  { %v2578_v40 = vadd.f32 %v2515_v38, %v2468_v51  ;;  %v2579_v41 = vadd.f32 %v2535_v11, %v2469_v6 }
 0x3e8   :  { %v2617_v47 = vmul.f32 0.2, %v2613_v59  ;;  %v2618_v44 = vmul.f32 0.2, %v2614_v37 }
 0x3e9   :  { %v2586_v21 = vmul.f32 %v2584_v7, %v2578_v40  ;;  %v2587_v26 = vmul.f32 %v2584_v7, %v2579_v41 }
 0x3ea   :  { %v2621_v24 = vmax.f32 %v2613_v59, %v2617_v47  ;;  %v2622_v46 = vmax.f32 %v2614_v37, %v2618_v44 }
 0x3eb   :  { %v2603_v20 = vadd.f32 %v2595_v33, %v2586_v21  ;;  %v2604_v60 = vadd.f32 %v2596_v42, %v2587_v26 }
 0x3ec   :  { %v2634_v5 = vmul.f32 %v2630_v53, %v2621_v24  ;;  %2946 = vst [vmem:[%s3951_s11 + $0x10] sm:$0xff] %v2621_v24  ;;  %v2635_v14 = vmul.f32 %v2630_v53, %v2622_v46 }
 0x3ed   :  { %v2611_v39 = vadd.f32 %v2609_v36, %v2603_v20  ;;  %v2612_v54 = vadd.f32 %v2609_v36, %v2604_v60  ;;  %2947 = vst [vmem:[%s3951_s11 + $0x18] sm:$0xff] %v2622_v46 }
 0x3ee   :  { %2717 = vmatpush.msra.mxu2 %v2634_v5  ;;  %2740 = vmatpush.msra.mxu3 %v2635_v14 }
 0x3ef   :  { %v2615_v30 = vmul.f32 0.2, %v2611_v39  ;;  %v2616_v55 = vmul.f32 0.2, %v2612_v54  ;;  %2942 = vmatmul.msk.f32.vlgmr.msra.gmra.mxu2 %vm1666_vm1, %v2636_v18  ;;  %2944 = vmatmul.msk.f32.vlgmr.msra.gmra.mxu3 %vm1666_vm1, %v2636_v18 }
 0x3f1   :  { %v2619_v45 = vmax.f32 %v2611_v39, %v2615_v30  ;;  %v2620_v49 = vmax.f32 %v2612_v54, %v2616_v55 }
 0x3f3   :  { %2748 = vst [vmem:[%s3951_s11] sm:$0xff] %v2619_v45  ;;  %v2632_v50 = vmul.f32 %v2626_v57, %v2619_v45  ;;  %v2633_v17 = vmul.f32 %v2626_v57, %v2620_v49 }
 0x3f4   :  { %2749 = vst [vmem:[%s3951_s11 + $0x8] sm:$0xff] %v2620_v49 }
 0x3f5   :  { %2671 = vmatpush.msrb.mxu0 %v2632_v50  ;;  %2694 = vmatpush.msra.mxu1 %v2633_v17 }
 0x3f6   :  { %2938 = vmatmul.msk.f32.vlgmr.msrb.gmra.mxu0 %vm1666_vm1, %v2636_v18  ;;  %2940 = vmatmul.msk.f32.vlgmr.msra.gmra.mxu1 %vm1666_vm1, %v2636_v18 }
 0x3f7   :  { %2943 = vmatmul.msk.f32.gmra.mxu2 %vm1666_vm1, %v2637_v61  ;;  %2945 = vmatmul.msk.f32.gmra.mxu3 %vm1666_vm1, %v2637_v61 }
 0x3fe   :  { %2939 = vmatmul.msk.f32.gmra.mxu0 %vm1666_vm1, %v2637_v61  ;;  %2941 = vmatmul.msk.f32.gmra.mxu1 %vm1666_vm1, %v2637_v61 }
 0x472   :  { %v2719_v13 = vpop.f32.mrf.mxu2  ;;  %v2742_v19 = vpop.f32.mrf.mxu3 }
 0x473   :  { %v2673_v2 = vpop.f32.mrf.mxu0  ;;  %v2696_v52 = vpop.f32.mrf.mxu1  ;;  %v2720_v0 = vadd.f32 %v2719_v13, %v2643_v4  ;;  %v2743_v7 = vadd.f32 %v2742_v19, %v2643_v4 }
 0x474   :  { %v2674_v43 = vadd.f32 %v2673_v2, %v2643_v4  ;;  %v2697_v1 = vadd.f32 %v2696_v52, %v2643_v4 }
 0x475   :  { %2948 = vst [vmem:[%s3952_s12 + $0x20] sm:$0xff] %v2720_v0 }
 0x476   :  { %2750 = vst [vmem:[%s3952_s12] sm:$0xff] %v2674_v43 }
 0x477   :  { %2751 = vst [vmem:[%s3952_s12 + $0x8] sm:$0xff] %v2697_v1 }
 0x478   :  { %2949 = vst [vmem:[%s3952_s12 + $0x28] sm:$0xff] %v2743_v7 }
 0x47a   :  { %v2722_v27 = vpop.f32.mrf.mxu2  ;;  %v2745_v23 = vpop.f32.mrf.mxu3 }
 0x47b   :  { %v2676_v25 = vpop.f32.mrf.mxu0  ;;  %v2699_v12 = vpop.f32.mrf.mxu1  ;;  %v2723_v28 = vadd.f32 %v2722_v27, %v2648_v22  ;;  %v2746_v48 = vadd.f32 %v2745_v23, %v2648_v22 }
 0x47c   :  { %v2677_v3 = vadd.f32 %v2676_v25, %v2648_v22  ;;  %v2700_v31 = vadd.f32 %v2699_v12, %v2648_v22 }
 0x47d   :  { %2950 = vst [vmem:[%s3952_s12 + $0x30] sm:$0xf] %v2723_v28 }
 0x47e   :  { %2752 = vst [vmem:[%s3952_s12 + $0x10] sm:$0xf] %v2677_v3 }
 0x47f   :  { %2753 = vst [vmem:[%s3952_s12 + $0x18] sm:$0xf] %v2700_v31 }
 0x480   :  { %2951 = vst [vmem:[%s3952_s12 + $0x38] sm:$0xf] %v2746_v48 }
 0x481   :  { %2770 = vsyncpa [#allocation3], 1 }

</bundles_post_ra>
